<compile_context>
chip_gen: v7x
topology: tpu7x:2x2x1
jax: 0.10.0
libtpu: 0.0.40
codegen_flags: <defaults>
</compile_context>

<pallas_src>
import math

import jax
import jax.numpy as jnp
from jax.experimental import pallas as pl
from jax.experimental.pallas import tpu as pltpu


def _basic_block_kernel(scales_ref, x_ref, w_ref, bias_ref, out_ref, a_ref):
    """One (batch b, row-strip s) grid step.

    scales_ref: SMEM (2,)                f32  [1/act_scale, conv_scale*act_scale]
    x_ref:      VMEM (1, H+2, W+2, Cin)  f32  whole padded NHWC image (resident over s)
    w_ref:      VMEM (9*Cin, Cout)       bf16 quantized weights, K ordered (dy, dx, ci)
    bias_ref:   VMEM (1, Cout)           f32  quantized bias
    out_ref:    VMEM (1, Hs, W, Cout)    f32  output strip
    a_ref:      VMEM (Hs*W, 9*Cin)       bf16 scratch: im2col operand for this strip
    """
    inv_act_scale = scales_ref[0]
    out_scale = scales_ref[1]            # conv_scale * act_scale (folded epilogue)

    _, hs, W, cout = out_ref.shape
    cin = x_ref.shape[3]

    # Padded-image rows needed by this strip: hs output rows + 2 halo rows.
    row0 = pl.multiple_of(pl.program_id(1) * hs, hs)
    xs = x_ref[0, pl.ds(row0, hs + 2), :, :]               # (hs+2, W+2, Cin) f32

    # quantize_activations_gemm_A(x, act_scale) — once per pixel of the strip.
    # TODO(synk): exact body not provided; symmetric int8: round(x/scale), clip.
    xq = jnp.clip(jnp.round(xs * inv_act_scale), -128.0, 127.0).astype(jnp.bfloat16)

    # Build the K = 9*Cin im2col operand ONCE per strip in VMEM scratch, then do a
    # single bf16 MXU matmul with f32 accumulation (no 9-way accumulator chain).
    for t in range(9):                                      # static unroll over (dy, dx)
        dy, dx = t // 3, t % 3
        a_ref[:, t * cin:(t + 1) * cin] = (
            xq[dy:dy + hs, dx:dx + W, :].reshape(hs * W, cin))

    acc = jnp.dot(a_ref[...], w_ref[...], preferred_element_type=jnp.float32)

    # (+ quantized bias) * conv_scale, ReLU6S(scale=act_scale), * act_scale, folded:
    #   clip((acc + bias_q) * (conv_scale*act_scale), 0, 6)      (requires act_scale > 0)
    # TODO(synk): ReLU6S body not provided; clamp so the final output lands in [0, 6].
    out = jnp.clip((acc + bias_ref[...]) * out_scale, 0.0, 6.0)
    out_ref[...] = out.reshape(1, hs, W, cout).astype(out_ref.dtype)


def _pick_strip_rows(H):
    """Largest of (32, 16, 8) that divides H and is < H, else the whole image."""
    for cand in (32, 16, 8):
        if cand < H and H % cand == 0:
            return cand
    return H


def basic_block_forward(x_nchw, weight, bias, act_scale):
    """x_nchw: (B, Cin, H, W) f32; weight: (Cout, Cin, 3, 3) f32; bias: (Cout,) f32."""
    B, Cin, H, W = x_nchw.shape
    Cout = weight.shape[0]
    act_scale = jnp.asarray(act_scale, jnp.float32)   # must be > 0 for the folded clip

    # quantize_weight_gemm_S: symmetric per-tensor int8 quantization (param prep).
    conv_scale = (jnp.max(jnp.abs(weight)) / 127.0).astype(jnp.float32)
    wq = jnp.clip(jnp.round(weight / conv_scale), -127.0, 127.0)

    # quantize_bias_gemm(bias / (conv_scale * bias_scale)); bias_scale == act_scale.
    bias_q = jnp.round(bias / (conv_scale * act_scale))

    # Single K = 9*Cin weight matrix, K ordered (dy, dx, ci) to match the in-kernel
    # im2col build.  bf16 is exact for int8-magnitude values (do NOT use fp8 on v7x).
    w_mat = jnp.transpose(wq, (2, 3, 1, 0)).reshape(9 * Cin, Cout).astype(jnp.bfloat16)
    bias_row = bias_q.reshape(1, Cout).astype(jnp.float32)

    # NCHW -> NHWC with pad=1.  The layout change is unavoidable at this boundary and
    # XLA fuses the zero-pad into the same copy (no extra HBM pass); zeros quantize to
    # zero, so quantizing inside the kernel after padding is exact.
    x_nhwc = jnp.transpose(x_nchw, (0, 2, 3, 1))
    xp = jnp.pad(x_nhwc, ((0, 0), (1, 1), (1, 1), (0, 0)))

    scales = jnp.stack([1.0 / act_scale, conv_scale * act_scale]).astype(jnp.float32)

    Hs = _pick_strip_rows(H)
    n_strips = H // Hs

    out_nhwc = pl.pallas_call(
        _basic_block_kernel,
        out_shape=jax.ShapeDtypeStruct((B, H, W, Cout), jnp.float32),  # no Cout padding
        grid=(B, n_strips),
        in_specs=[
            pl.BlockSpec(memory_space=pltpu.MemorySpace.SMEM),                # scales
            pl.BlockSpec((1, H + 2, W + 2, Cin), lambda b, s: (b, 0, 0, 0)),  # padded img, resident over s
            # NOTE: weights/bias are tiny here (36x8 bf16); for deep VGG layers set
            # pipeline_mode=pl.Buffered(1) (or stage once into scratch) so these
            # constant-index residents are not double-buffered.
            pl.BlockSpec((9 * Cin, Cout), lambda b, s: (0, 0)),               # weights (resident)
            pl.BlockSpec((1, Cout), lambda b, s: (0, 0)),                     # bias (resident)
        ],
        out_specs=pl.BlockSpec((1, Hs, W, Cout), lambda b, s: (b, s, 0, 0)),
        scratch_shapes=[pltpu.VMEM((Hs * W, 9 * Cin), jnp.bfloat16)],
        compiler_params=pltpu.CompilerParams(
            # Both axes parallel: batch and row strips can land on either TC (v7x).
            dimension_semantics=("parallel", "parallel"),
            # Tiny usage here; for big layers raise toward ~100 MiB on v5e/v6e,
            # keep <= 64 MiB on v7x.
            vmem_limit_bytes=64 * 1024 * 1024),
    )(scales, xp, w_mat, bias_row)

    # NHWC -> NCHW (no channel-slice pass needed any more).
    return jnp.transpose(out_nhwc, (0, 3, 1, 2))


def reference_forward(x_nchw, weight, bias, act_scale):
    """Pure-JAX reference of the same quantized forward pass (NCHW)."""
    act_scale = jnp.asarray(act_scale, jnp.float32)
    conv_scale = (jnp.max(jnp.abs(weight)) / 127.0).astype(jnp.float32)
    wq = jnp.clip(jnp.round(weight / conv_scale), -127.0, 127.0)
    bias_q = jnp.round(bias / (conv_scale * act_scale))
    x1 = jnp.clip(jnp.round(x_nchw * (1.0 / act_scale)), -128.0, 127.0)
    out = jax.lax.conv_general_dilated(
        x1, wq, window_strides=(1, 1), padding=((1, 1), (1, 1)),
        dimension_numbers=("NCHW", "OIHW", "NCHW"))
    out = (out + bias_q[None, :, None, None]) * conv_scale
    out = jnp.clip(out, 0.0, 6.0 / act_scale) * act_scale
    return out


if __name__ == "__main__":
    B, Cin, H, W = 2, 4, 16, 16   # small NCHW input, consistent with conv3x3
    Cout = 8                       # planes
    act_scale = 0.1

    key = jax.random.PRNGKey(0)
    kx, kw, kb = jax.random.split(key, 3)
    x = jax.random.normal(kx, (B, Cin, H, W), dtype=jnp.float32)

    # Deterministic Conv2d-style init (uniform +/- 1/sqrt(fan_in)).
    fan_in = Cin * 3 * 3
    bound = 1.0 / math.sqrt(fan_in)
    weight = jax.random.uniform(kw, (Cout, Cin, 3, 3), jnp.float32, -bound, bound)
    bias = jax.random.uniform(kb, (Cout,), jnp.float32, -bound, bound)

    fwd = jax.jit(lambda xx: basic_block_forward(xx, weight, bias, act_scale))
    out = fwd(x)
    jax.block_until_ready(out)

    ref = reference_forward(x, weight, bias, act_scale)
    assert out.shape == (B, Cout, H, W)
    assert jnp.allclose(out, ref, atol=1e-3, rtol=1e-3), "mismatch vs reference"

    print("KERNEL_OK")
</pallas_src>

<mosaic_0001>
module attributes {stable_mosaic.version = 11 : i64} {
  func.func @_basic_block_kernel(%arg0: i32, %arg1: i32, %arg2: memref<2xf32, #tpu.memory_space<smem>>, %arg3: memref<1x18x18x4xf32, #tpu.memory_space<vmem>>, %arg4: memref<36x8xbf16, #tpu.memory_space<vmem>>, %arg5: memref<1x8xf32, #tpu.memory_space<vmem>>, %arg6: memref<1x8x16x8xf32, #tpu.memory_space<vmem>>, %arg7: memref<128x36xbf16, #tpu.memory_space<vmem>>) attributes {dimension_semantics = [#tpu.dimension_semantics<parallel>, #tpu.dimension_semantics<parallel>], iteration_bounds = array<i64: 2, 2>, scalar_prefetch = 0 : i64, scratch_operands = 1 : i64, tpu.core_type = #tpu.core_type<tc>, window_params = [{transform_indices = @transform_0, window_bounds = array<i64: 2>}, {transform_indices = @transform_1, window_bounds = array<i64: 1, 18, 18, 4>}, {pipeline_mode = #tpu.pipeline_mode<synchronous>, transform_indices = @transform_2, window_bounds = array<i64: 36, 8>}, {pipeline_mode = #tpu.pipeline_mode<synchronous>, transform_indices = @transform_3, window_bounds = array<i64: 1, 8>}, {transform_indices = @transform_4, window_bounds = array<i64: 1, 8, 16, 8>}]} {
    %c0 = arith.constant 0 : index
    %0 = memref.load %arg2[%c0] : memref<2xf32, #tpu.memory_space<smem>>
    %c1 = arith.constant 1 : index
    %1 = memref.load %arg2[%c1] : memref<2xf32, #tpu.memory_space<smem>>
    %c8_i32 = arith.constant 8 : i32
    %2 = arith.muli %arg1, %c8_i32 : i32
    %3 = tpu.assume_multiple %2, 8 : i32
    %c0_0 = arith.constant 0 : index
    %4 = arith.index_cast %3 : i32 to index
    %c0_1 = arith.constant 0 : index
    %c0_2 = arith.constant 0 : index
    %5 = vector.load %arg3[%c0_0, %4, %c0_1, %c0_2] : memref<1x18x18x4xf32, #tpu.memory_space<vmem>>, vector<1x10x18x4xf32>
    %6 = vector.shape_cast %5 : vector<1x10x18x4xf32> to vector<10x18x4xf32>
    %7 = vector.broadcast %0 : f32 to vector<10x18x4xf32>
    %8 = arith.mulf %6, %7 : vector<10x18x4xf32>
    %9 = math.roundeven %8 : vector<10x18x4xf32>
    %cst = arith.constant -1.280000e+02 : f32
    %cst_3 = arith.constant 1.270000e+02 : f32
    %10 = vector.broadcast %cst : f32 to vector<10x18x4xf32>
    %11 = arith.maximumf %10, %9 : vector<10x18x4xf32>
    %12 = vector.broadcast %cst_3 : f32 to vector<10x18x4xf32>
    %13 = arith.minimumf %12, %11 : vector<10x18x4xf32>
    %14 = arith.truncf %13 : vector<10x18x4xf32> to vector<10x18x4xbf16>
    %15 = vector.extract_strided_slice %14 {offsets = [0, 0, 0], sizes = [8, 16, 4], strides = [1, 1, 1]} : vector<10x18x4xbf16> to vector<8x16x4xbf16>
    %16 = vector.shape_cast %15 : vector<8x16x4xbf16> to vector<128x4xbf16>
    %c0_4 = arith.constant 0 : index
    %c0_5 = arith.constant 0 : index
    %17 = vector.load %arg7[%c0_4, %c0_5] : memref<128x36xbf16, #tpu.memory_space<vmem>>, vector<128x4xbf16>
    tpu.vector_store %arg7[%c0_4, %c0_5], %16 {strides = array<i32>} : memref<128x36xbf16, #tpu.memory_space<vmem>>, vector<128x4xbf16>,
    %18 = vector.extract_strided_slice %14 {offsets = [0, 1, 0], sizes = [8, 16, 4], strides = [1, 1, 1]} : vector<10x18x4xbf16> to vector<8x16x4xbf16>
    %19 = vector.shape_cast %18 : vector<8x16x4xbf16> to vector<128x4xbf16>
    %c0_6 = arith.constant 0 : index
    %c4 = arith.constant 4 : index
    %20 = vector.load %arg7[%c0_6, %c4] : memref<128x36xbf16, #tpu.memory_space<vmem>>, vector<128x4xbf16>
    tpu.vector_store %arg7[%c0_6, %c4], %19 {strides = array<i32>} : memref<128x36xbf16, #tpu.memory_space<vmem>>, vector<128x4xbf16>,
    %21 = vector.extract_strided_slice %14 {offsets = [0, 2, 0], sizes = [8, 16, 4], strides = [1, 1, 1]} : vector<10x18x4xbf16> to vector<8x16x4xbf16>
    %22 = vector.shape_cast %21 : vector<8x16x4xbf16> to vector<128x4xbf16>
    %c0_7 = arith.constant 0 : index
    %c8 = arith.constant 8 : index
    %23 = vector.load %arg7[%c0_7, %c8] : memref<128x36xbf16, #tpu.memory_space<vmem>>, vector<128x4xbf16>
    tpu.vector_store %arg7[%c0_7, %c8], %22 {strides = array<i32>} : memref<128x36xbf16, #tpu.memory_space<vmem>>, vector<128x4xbf16>,
    %24 = vector.extract_strided_slice %14 {offsets = [1, 0, 0], sizes = [8, 16, 4], strides = [1, 1, 1]} : vector<10x18x4xbf16> to vector<8x16x4xbf16>
    %25 = vector.shape_cast %24 : vector<8x16x4xbf16> to vector<128x4xbf16>
    %c0_8 = arith.constant 0 : index
    %c12 = arith.constant 12 : index
    %26 = vector.load %arg7[%c0_8, %c12] : memref<128x36xbf16, #tpu.memory_space<vmem>>, vector<128x4xbf16>
    tpu.vector_store %arg7[%c0_8, %c12], %25 {strides = array<i32>} : memref<128x36xbf16, #tpu.memory_space<vmem>>, vector<128x4xbf16>,
    %27 = vector.extract_strided_slice %14 {offsets = [1, 1, 0], sizes = [8, 16, 4], strides = [1, 1, 1]} : vector<10x18x4xbf16> to vector<8x16x4xbf16>
    %28 = vector.shape_cast %27 : vector<8x16x4xbf16> to vector<128x4xbf16>
    %c0_9 = arith.constant 0 : index
    %c16 = arith.constant 16 : index
    %29 = vector.load %arg7[%c0_9, %c16] : memref<128x36xbf16, #tpu.memory_space<vmem>>, vector<128x4xbf16>
    tpu.vector_store %arg7[%c0_9, %c16], %28 {strides = array<i32>} : memref<128x36xbf16, #tpu.memory_space<vmem>>, vector<128x4xbf16>,
    %30 = vector.extract_strided_slice %14 {offsets = [1, 2, 0], sizes = [8, 16, 4], strides = [1, 1, 1]} : vector<10x18x4xbf16> to vector<8x16x4xbf16>
    %31 = vector.shape_cast %30 : vector<8x16x4xbf16> to vector<128x4xbf16>
    %c0_10 = arith.constant 0 : index
    %c20 = arith.constant 20 : index
    %32 = vector.load %arg7[%c0_10, %c20] : memref<128x36xbf16, #tpu.memory_space<vmem>>, vector<128x4xbf16>
    tpu.vector_store %arg7[%c0_10, %c20], %31 {strides = array<i32>} : memref<128x36xbf16, #tpu.memory_space<vmem>>, vector<128x4xbf16>,
    %33 = vector.extract_strided_slice %14 {offsets = [2, 0, 0], sizes = [8, 16, 4], strides = [1, 1, 1]} : vector<10x18x4xbf16> to vector<8x16x4xbf16>
    %34 = vector.shape_cast %33 : vector<8x16x4xbf16> to vector<128x4xbf16>
    %c0_11 = arith.constant 0 : index
    %c24 = arith.constant 24 : index
    %35 = vector.load %arg7[%c0_11, %c24] : memref<128x36xbf16, #tpu.memory_space<vmem>>, vector<128x4xbf16>
    tpu.vector_store %arg7[%c0_11, %c24], %34 {strides = array<i32>} : memref<128x36xbf16, #tpu.memory_space<vmem>>, vector<128x4xbf16>,
    %36 = vector.extract_strided_slice %14 {offsets = [2, 1, 0], sizes = [8, 16, 4], strides = [1, 1, 1]} : vector<10x18x4xbf16> to vector<8x16x4xbf16>
    %37 = vector.shape_cast %36 : vector<8x16x4xbf16> to vector<128x4xbf16>
    %c0_12 = arith.constant 0 : index
    %c28 = arith.constant 28 : index
    %38 = vector.load %arg7[%c0_12, %c28] : memref<128x36xbf16, #tpu.memory_space<vmem>>, vector<128x4xbf16>
    tpu.vector_store %arg7[%c0_12, %c28], %37 {strides = array<i32>} : memref<128x36xbf16, #tpu.memory_space<vmem>>, vector<128x4xbf16>,
    %39 = vector.extract_strided_slice %14 {offsets = [2, 2, 0], sizes = [8, 16, 4], strides = [1, 1, 1]} : vector<10x18x4xbf16> to vector<8x16x4xbf16>
    %40 = vector.shape_cast %39 : vector<8x16x4xbf16> to vector<128x4xbf16>
    %c0_13 = arith.constant 0 : index
    %c32 = arith.constant 32 : index
    %41 = vector.load %arg7[%c0_13, %c32] : memref<128x36xbf16, #tpu.memory_space<vmem>>, vector<128x4xbf16>
    tpu.vector_store %arg7[%c0_13, %c32], %40 {strides = array<i32>} : memref<128x36xbf16, #tpu.memory_space<vmem>>, vector<128x4xbf16>,
    %c0_14 = arith.constant 0 : index
    %c0_15 = arith.constant 0 : index
    %42 = vector.load %arg7[%c0_14, %c0_15] : memref<128x36xbf16, #tpu.memory_space<vmem>>, vector<128x36xbf16>
    %c0_16 = arith.constant 0 : index
    %c0_17 = arith.constant 0 : index
    %43 = vector.load %arg4[%c0_16, %c0_17] : memref<36x8xbf16, #tpu.memory_space<vmem>>, vector<36x8xbf16>
    %cst_18 = arith.constant dense<0.000000e+00> : vector<128x8xf32>
    %44 = tpu.matmul %42, %43, %cst_18 {dimension_numbers = #tpu.dot_dimension_numbers<[1], [0], [0], [1], [0, 0, 1, 1], [], []>} : vector<128x36xbf16>, vector<36x8xbf16>, vector<128x8xf32> -> vector<128x8xf32>
    %c0_19 = arith.constant 0 : index
    %c0_20 = arith.constant 0 : index
    %45 = vector.load %arg5[%c0_19, %c0_20] : memref<1x8xf32, #tpu.memory_space<vmem>>, vector<1x8xf32>
    %46 = vector.broadcast %45 : vector<1x8xf32> to vector<128x8xf32>
    %47 = arith.addf %44, %46 : vector<128x8xf32>
    %48 = vector.broadcast %1 : f32 to vector<128x8xf32>
    %49 = arith.mulf %47, %48 : vector<128x8xf32>
    %cst_21 = arith.constant 0.000000e+00 : f32
    %cst_22 = arith.constant 6.000000e+00 : f32
    %50 = vector.broadcast %cst_21 : f32 to vector<128x8xf32>
    %51 = arith.maximumf %50, %49 : vector<128x8xf32>
    %52 = vector.broadcast %cst_22 : f32 to vector<128x8xf32>
    %53 = arith.minimumf %52, %51 : vector<128x8xf32>
    %54 = vector.shape_cast %53 : vector<128x8xf32> to vector<1x8x16x8xf32>
    %c0_23 = arith.constant 0 : index
    %c0_24 = arith.constant 0 : index
    %c0_25 = arith.constant 0 : index
    %c0_26 = arith.constant 0 : index
    %55 = vector.load %arg6[%c0_23, %c0_24, %c0_25, %c0_26] : memref<1x8x16x8xf32, #tpu.memory_space<vmem>>, vector<1x8x16x8xf32>
    tpu.vector_store %arg6[%c0_23, %c0_24, %c0_25, %c0_26], %54 {strides = array<i32>} : memref<1x8x16x8xf32, #tpu.memory_space<vmem>>, vector<1x8x16x8xf32>,
    return
  }
  func.func @transform_0(%arg0: i32, %arg1: i32) -> i32 {
    %c0_i32 = arith.constant 0 : i32
    %c0_i32_0 = arith.constant 0 : i32
    return %c0_i32 : i32
  }
  func.func @transform_1(%arg0: i32, %arg1: i32) -> (i32, i32, i32, i32) {
    %c0_i32 = arith.constant 0 : i32
    %c0_i32_0 = arith.constant 0 : i32
    %c0_i32_1 = arith.constant 0 : i32
    %c0_i32_2 = arith.constant 0 : i32
    return %arg0, %c0_i32, %c0_i32_0, %c0_i32_1 : i32, i32, i32, i32
  }
  func.func @transform_2(%arg0: i32, %arg1: i32) -> (i32, i32) {
    %c0_i32 = arith.constant 0 : i32
    %c0_i32_0 = arith.constant 0 : i32
    %c0_i32_1 = arith.constant 0 : i32
    return %c0_i32, %c0_i32_0 : i32, i32
  }
  func.func @transform_3(%arg0: i32, %arg1: i32) -> (i32, i32) {
    %c0_i32 = arith.constant 0 : i32
    %c0_i32_0 = arith.constant 0 : i32
    %c0_i32_1 = arith.constant 0 : i32
    return %c0_i32, %c0_i32_0 : i32, i32
  }
  func.func @transform_4(%arg0: i32, %arg1: i32) -> (i32, i32, i32, i32) {
    %c0_i32 = arith.constant 0 : i32
    %c0_i32_0 = arith.constant 0 : i32
    %c0_i32_1 = arith.constant 0 : i32
    return %arg0, %arg1, %c0_i32, %c0_i32_0 : i32, i32, i32, i32
  }
}

</mosaic_0001>

<bundles_post_ra>
// kernel: _lambda_.1
= control target key start
LH: loop header
LB: loop body
LE: loop exit
PB: predicated region body
PF: predicated region fallthrough
CT: control target
= control target key end

     0   :  { %s2533_s0 = inlined_call_operand.hbm [shape: f32[2], index: 0, kind: input, shape index: {}]   ;;  %s2534_s1 = inlined_call_operand.hbm [shape: f32[2,18,18,4], index: 1, kind: input, shape index: {}]   ;;  %s2535_s2 = inlined_call_operand.hbm [shape: bf16[36,8], index: 2, kind: input, shape index: {}]   ;;  %s2536_s3 = inlined_call_operand.hbm [shape: f32[1,8], index: 3, kind: input, shape index: {}]   ;;  %s2537_s4 = inlined_call_operand.hbm [shape: f32[2,16,16,8], index: 4, kind: output, shape index: {}]  }
   0x1   :  { %2548 = sst [smem:[#allocation19_spill]] %s2533_s0 }
   0x2   :  { %2549 = sst [smem:[#allocation20_spill]] %s2535_s2 }
   0x3   :  { %2550 = sst [smem:[#allocation21_spill]] %s2536_s3 }
   0x4   :  { %2551 = sst [smem:[#allocation22_spill]] %s2537_s4 }
   0x5   :  { %9 = vsyncpa [#allocation6], 0 }
   0x6   :  { %10 = vsyncpa [#allocation4], 0 }
   0x7   :  { %12 = vsyncpa [#allocation4 + $0x1], 0 }
   0x8   :  { %13 = vsyncpa [#allocation9], 0 }
   0x9   :  { %14 = vsyncpa [#allocation5], 0 }
   0xa   :  { %16 = vsyncpa [#allocation5 + $0x1], 0  ;;  %s1789_s15 = smov 0   ;;  %s1791_s16 = smov 0  }
   0xb   :  { %s1793_s17 = smov 0   ;;  %s1795_s18 = smov 0  }
   0xc   :  { %s1797_s19 = smov 0   ;;  %s1799_s20 = smov 0  }
   0xd   :  { %s1801_s21 = smov 0   ;;  %s1803_s22 = smov 0  }
   0xe   :  { %s1805_s23 = smov 0   ;;  %s1807_s24 = smov 0  }
   0xf   :  { %s1809_s25 = smov 0  }
  0x10 LB: > { %2552 = sst [smem:[#allocation16_spill]] %s1704_s15  ;;  %s1256_s26 = sadd.s32 4294967295, %s1744_s25   ;;  %s1744_s25 = sphi %s1809_s25, %s22_s25   ;;  %s1740_s24 = sphi %s1807_s24, %s2586_s24   ;;  %s1736_s23 = sphi %s1805_s23, %s2585_s23   ;;  %s1732_s22 = sphi %s1803_s22, %s2584_s22   ;;  %s1728_s21 = sphi %s1801_s21, %s2583_s21   ;;  %s1724_s20 = sphi %s1799_s20, %s2582_s20   ;;  %s1720_s19 = sphi %s1797_s19, %s2581_s19   ;;  %s1716_s18 = sphi %s1795_s18, %s2580_s18   ;;  %s1712_s17 = sphi %s1793_s17, %s2579_s17   ;;  %s1708_s16 = sphi %s1791_s16, %s2578_s16   ;;  %s1704_s15 = sphi %s1789_s15, %s2577_s15  }
  0x11   : > { %s1257_s27 = sadd.s32 4294967294, %s1744_s25   ;;  %p75_p0 = scmp.ne.s32.totalorder %s1720_s19, %s1716_s18 }
  0x12   : > { %p1845_p1 = scmp.eq.s32.totalorder %s1256_s26, 0  ;;  %p142_p2 = scmp.ne.s32.totalorder %s1712_s17, %s1708_s16 }
  0x13   : > { %p143_p4 = scmp.eq.s32.totalorder %s1256_s26, 3  ;;  %p148_p5 = scmp.ne.s32.totalorder %s1708_s16, %s1704_s15 }
  0x14   : > { %s2553_s28 = scalar_select %p1845_p1, 1, 0 }
  0x15   : > { %p1854_p3 = por %p1845_p1, %p75_p0  ;;  %p149_p6 = scmp.eq.s32.totalorder %s1257_s27, 3 }
  0x16   : > { %p1860_p7 = por %p143_p4, %p142_p2  ;;  %p1258_p8 = scmp.ge.s32.totalorder %s1744_s25, 1 }
  0x17   : > { %s2554_s30 = scalar_select %p1854_p3, 1, 0 }
  0x18   : > { %s2555_s5 = scalar_select %p1860_p7, 1, 0 }
  0x19   : > { %p1865_p9 = por %p149_p6, %p148_p5  ;;  %p156_p10 = scmp.lt.s32.totalorder %s1744_s25, 5 }
  0x1a   : > { %2556 = sst [smem:[#allocation17_spill]] %s2555_s5  ;;  %s1746_s8 = smov [#allocation8]  }
  0x1b   : > { %s2557_s6 = scalar_select %p1865_p9, 1, 0 }
  0x1c   : > { %p1870_p11 = pnand %p1258_p8, %p156_p10  ;;  %s177_s9 = sshll.u32 %s1746_s8, 4  ;;  %s178_s9 = int_to_ptr.vmem [resolvable:$true] %s177_s9 }
  0x1d   : > { %2558 = sst [smem:[#allocation18_spill]] %s2557_s6  ;;  %s2561_s2 = sld [smem:[#allocation20_spill]] }
  0x1e   : > { %s2559_s7 = scalar_select %p1870_p11, 1, 0 }
  0x1f   : > { %p1382_p12 = pneg %p1870_p11 }
  0x21   : > { %p1878_p13 = pnand %p1382_p12, %p1845_p1 }
  0x23   : > { %s1515_s13 = scalar_lea.hbm %s2561_s2, 320  ;;  %p1890_p2 = pneg %p1878_p13 }
  0x24   : > { %p1516_p0 = scmp.ne.s32.totalorder %s2561_s2, %s1515_s13  ;;  %p1522_p6 = scmp.lt.u32.totalorder %s1515_s13, %s2561_s2 }
  0x26   : > { %p1518_p4 = pnand %p1890_p2, %p1516_p0 }
  0x28   : > { %p1519_p5 = pneg %p1518_p4 }
  0x2a   : > { %p1524_p8 = pnand %p1522_p6, %p1519_p5 }
  0x2c   : > { %1527 = shalt.err (!%p1524_p8)
}
  0x2d   : > { %s1528_s11 = scalar_lea.vmem %s178_s9, 320  ;;  %p1536_p7 = scmp.lt.s32.totalorder %s178_s9, %s178_s9 }
  0x2e   : > { %p1529_p10 = scmp.ne.s32.totalorder %s178_s9, %s1528_s11  ;;  %p1537_p3 = scmp.lt.s32.totalorder %s1528_s11, %s1528_s11 }
  0x30   : > { %p1531_p12 = pnand %p1529_p10, %p1890_p2  ;;  %p1538_p1 = por %p1537_p3, %p1536_p7 }
  0x32   : > { %p1532_p9 = pneg %p1531_p12 }
  0x34   : > { %p1539_p11 = pnand %p1538_p1, %p1532_p9 }
  0x36   : > { %1542 = shalt.err (!%p1539_p11)
}
  0x37   : > { %s1747_s12 = smov 64   ;;  %s1748_s14 = smov 4  }
  0x38   : > { %1388 = dma.hbm_to_vmem [thread:$0]  (!%p1878_p13), %s2561_s2, 320, %s178_s9, [#allocation9], %s1747_s12, %s1747_s12, %s1748_s14  }
  0x39   : > { %s2563_s0 = sld [smem:[#allocation19_spill]] }
  0x3f   : > { %s1543_s29 = scalar_lea.hbm %s2563_s0, 16 }
  0x40   : > { %p1544_p0 = scmp.ne.s32.totalorder %s2563_s0, %s1543_s29  ;;  %p1550_p7 = scmp.lt.u32.totalorder %s1543_s29, %s2563_s0 }
  0x42   : > { %p1546_p1 = pnand %p1544_p0, %p1890_p2 }
  0x44   : > { %p1547_p3 = pneg %p1546_p1 }
  0x46   : > { %p1552_p9 = pnand %p1550_p7, %p1547_p3 }
  0x48   : > { %1555 = shalt.err (!%p1552_p9)
}
  0x49   : > { %s1749_s5 = smov [#allocation3]   ;;  %s1750_s14 = smov [#allocation10]  }
  0x4a   : > { %1385 = dma.hbm_to_smem (!%p1878_p13), %s2563_s0, 16, %s1749_s5, [#allocation6]  }
  0x4b   : > { %s191_s15 = sshll.u32 %s1750_s14, 4  ;;  %s2564_s3 = sld [smem:[#allocation21_spill]]  ;;  %s192_s15 = int_to_ptr.vmem [resolvable:$true] %s191_s15 }
  0x51   : > { %s1556_s13 = scalar_lea.hbm %s2564_s3, 16 }
  0x52   : > { %p1557_p11 = scmp.ne.s32.totalorder %s2564_s3, %s1556_s13  ;;  %p1563_p6 = scmp.lt.u32.totalorder %s1556_s13, %s2564_s3 }
  0x54   : > { %p1559_p4 = pnand %p1557_p11, %p1890_p2 }
  0x56   : > { %p1560_p5 = pneg %p1559_p4 }
  0x58   : > { %p1565_p8 = pnand %p1563_p6, %p1560_p5 }
  0x5a   : > { %1568 = shalt.err (!%p1565_p8)
}
  0x5b   : > { %s1569_s5 = scalar_lea.vmem %s192_s15, 16  ;;  %s1576_s11 = scalar_lea.vmem %s192_s15, 32 }
  0x5c   : > { %p1570_p10 = scmp.ne.s32.totalorder %s192_s15, %s1569_s5  ;;  %p1577_p1 = scmp.lt.s32.totalorder %s192_s15, %s192_s15 }
  0x5d   : > { %p1578_p3 = scmp.lt.s32.totalorder %s1576_s11, %s1569_s5 }
  0x5e   : > { %p1572_p12 = pnand %p1570_p10, %p1890_p2 }
  0x5f   : > { %p1579_p7 = por %p1578_p3, %p1577_p1 }
  0x60   : > { %p1573_p0 = pneg %p1572_p12 }
  0x62   : > { %p1580_p9 = pnand %p1579_p7, %p1573_p0 }
  0x64   : > { %1583 = shalt.err (!%p1580_p9)
}
  0x65   : > { %1391 = dma.hbm_to_vmem [thread:$0]  (!%p1878_p13), %s2564_s3, 16, %s192_s15, [#allocation9]  }
  0x66   : > { %s31_s26 = sadd.s32 1, %s1736_s23  ;;  %s34_s14 = sadd.s32 1, %s1740_s24 }
  0x67   : > { %p32_p2 = scmp.ge.s32.totalorder %s31_s26, 2  ;;  %s62_s10 = sadd.s32 1, %s1724_s20 }
  0x68   : > { %p69_p11 = scmp.ne.s32.totalorder %s1724_s20, %s1720_s19  ;;  %p70_p4 = scmp.eq.s32.totalorder %s1744_s25, 0 }
  0x69   : > { %s2588_s26 = smov (%p32_p2, %s31_s26), 0  ;;  %s2590_s14 = smov (!%p32_p2, %s34_s14), %s1740_s24 }
  0x6a   : > { %s128_s6 = ssub.s32 %s1736_s23, %s2588_s26  ;;  %p36_p5 = scmp.ge.s32.totalorder %s2590_s14, 2 }
  0x6b   : > { %p1403_p6 = scmp.lt.s32.totalorder %s1744_s25, 4  ;;  %p1952_p13 = por %p70_p4, %p69_p11 }
  0x6c   : > { %s202_s18 = sand.u32 1, %s1724_s20   ;;  %s2592_s14 = smov (%p36_p5, %s2590_s14), 0 }
  0x6d   : > { %s1333_s13 = smul.u32 432, %s202_s18  ;;  %s59_s27 = ssub.s32 %s1740_s24, %s2592_s14 }
  0x6e   : > { %s1334_s4 = smul.u32 6912, %s1740_s24  ;;  %p60_p8 = scmp.eq.s32.totalorder %s59_s27, 0 }
  0x6f   : > { %s129_s29 = sor.u32 %s128_s6, %s59_s27  ;;  %s2566_s5 = sadd.s32 1, %s1712_s17 }
  0x70   : > { %p130_p10 = scmp.eq.s32.totalorder %s129_s29, 0  ;;  %s1973_s0 = scalar_lea.hbm %s2534_s1, %s1334_s4 }
  0x71   : > { %s1963_s8 = scalar_select %p60_p8, %s1724_s20, %s62_s10  }
  0x72   : > { %s1968_s11 = scalar_select %p130_p10, %s1712_s17, %s2566_s5  }
  0x73   : > { %s206_s2 = scalar_lea.vmem [#allocation7], %s1333_s13  ;;  %p1981_p12 = pnand %p1403_p6, %p1952_p13 }
  0x74   : > { %s213_s3 = sshll.u32 %s206_s2, 4  ;;  %s1985_s6 = scalar_lea.sflag [#allocation4], %s202_s18  ;;  %s1975_s3 = int_to_ptr.vmem [resolvable:$true] %s213_s3 }
  0x75   : > { %s1584_s27 = scalar_lea.hbm %s1973_s0, 6912  ;;  %p1586_p1 = pneg %p1981_p12 }
  0x76   : > { %p1585_p0 = scmp.ne.s32.totalorder %s1973_s0, %s1584_s27  ;;  %s1589_s15 = scalar_lea.hbm %s2534_s1, 13824 }
  0x77   : > { %p1590_p9 = scmp.lt.u32.totalorder %s1973_s0, %s2534_s1  ;;  %p1591_p2 = scmp.lt.u32.totalorder %s1589_s15, %s1584_s27 }
  0x78   : > { %p1587_p3 = pnand %p1586_p1, %p1585_p0  ;;  %p1593_p4 = scmp.lt.u32.totalorder %s1584_s27, %s1973_s0 }
  0x79   : > { %p1592_p11 = por %p1591_p2, %p1590_p9 }
  0x7a   : > { %p1588_p7 = pneg %p1587_p3 }
  0x7b   : > { %p1594_p5 = por %p1593_p4, %p1592_p11 }
  0x7d   : > { %p1595_p6 = pnand %p1594_p5, %p1588_p7 }
  0x7f   : > { %1598 = shalt.err (!%p1595_p6)
}
  0x80   : > { %s1599_s18 = scalar_lea.vmem %s1975_s3, 6912  ;;  %s1751_s5 = smov [#allocation7]  }
  0x81   : > { %p1600_p13 = scmp.ne.s32.totalorder %s1975_s3, %s1599_s18  ;;  %s1604_s9 = sshll.u32 %s1751_s5, 4  ;;  %s1605_s9 = int_to_ptr.vmem [resolvable:$false] %s1604_s9 }
  0x82   : > { %s1606_s12 = scalar_lea.vmem %s1605_s9, 13824  ;;  %p1607_p0 = scmp.lt.s32.totalorder %s1975_s3, %s1605_s9 }
  0x83   : > { %p1602_p8 = pnand %p1600_p13, %p1586_p1  ;;  %p1608_p3 = scmp.lt.s32.totalorder %s1606_s12, %s1599_s18 }
  0x85   : > { %p1603_p10 = pneg %p1602_p8  ;;  %p1609_p9 = por %p1608_p3, %p1607_p0 }
  0x87   : > { %p1610_p2 = pnand %p1609_p9, %p1603_p10 }
  0x89   : > { %1613 = shalt.err (!%p1610_p2)
}
  0x8a   : > { %s1752_s27 = smov 128   ;;  %s1753_s2 = smov 8  }
  0x8b   : > { %1395 = dma.hbm_to_vmem [thread:$0]  (!%p1981_p12), %s1973_s0, 6912, %s1975_s3, %s1985_s6, %s1752_s27, %s1752_s27, %s1753_s2  }
  0x8c   : > { %p2568_p1 = scmp.ne.s32.totalorder %s2559_s7, 0 }
  0x8d   : > { %p2569_p7 = scmp.ne.s32.totalorder (!%p2568_p1), %s2553_s28, 0 }
  0x8e   : > { %225 = sbr.rel (%p2568_p1) target bundleno = 666 (0x29a), region = 36 }
  0x95   : > { %1687 = dma.done.wait (%p2569_p7), [#allocation6], 16  }
  0x96   : > { %1689 = vsyncadd (%p2569_p7), [#allocation6], 4294967280  ;;  %s231_s13 = sand.u32 1, %s1720_s19   ;;  %p2570_p11 = scmp.ne.s32.totalorder %s2554_s30, 0 }
  0x97   : > { %s1335_s15 = smul.u32 432, %s231_s13  ;;  %s232_s4 = scalar_lea.sflag [#allocation4], %s231_s13 }
  0x99   : > { %s235_s29 = scalar_lea.vmem [#allocation7], %s1335_s15 }
  0x9a   : > { %1691 = dma.done.wait (%p2570_p11), %s232_s4, 6912  }
  0x9b   : > { %1693 = vsyncadd (%p2570_p11), %s232_s4, 4294960384 }
  0x9c   : > { %1695 = dma.done.wait (%p2569_p7), [#allocation9], 336  }
  0x9d   : > { %1697 = vsyncadd (%p2569_p7), [#allocation9], 4294966960 }
  0x9e   : > { %248 = sfence }
  0x9f   : > { %s271_s0 = sld [smem:[#allocation3]]  ;;  %s1271_s3 = smul.u32 192, %s1728_s21  ;;  %vm602_vm0 = vcmask 1046528   ;;  %vm456_vm1 = vsmask.f32 7424  ;;  %vm447_vm2 = vcmask 31744  }
  0xa0   : > { %s1754_s28 = smov 12   ;;  %s1755_s30 = smov 8   ;;  %vm952_vm3 = vcmask 1041408   ;;  %vm577_vm4 = vcmask 64544   ;;  %vm651_vm5 = vcmask 97344   ;;  %vm685_vm6 = vcmask 130144  }
  0xa1   : > { %s2029_s7 = scalar_lea.vmem %s235_s29, %s1271_s3 [#allocation7]  ;;  %s1756_s10 = smov 4   ;;  %vm730_vm7 = vcmask 162944   ;;  %vm767_vm8 = vcmask 195744   ;;  %vm801_vm9 = vcmask 228544   ;;  %vm846_vm10 = vcmask 261344  }
  0xa2   : > { %v291_v0 = vld [vmem:[%s2029_s7 + $0x78] sm:$0xff]  ;;  %v292_v1 = vld [vmem:[%s2029_s7 + $0x80] sm:$0xff]  ;;  %v294_v4 = vld [vmem:[%s2029_s7 + $0x90] sm:$0xff]  ;;  %s1757_s6 = smov 16   ;;  %s1758_s18 = smov 20   ;;  %vm883_vm11 = vcmask 294144  }
  0xa3   : > { %v279_v2 = vld [vmem:[%s2029_s7 + $0x18] sm:$0xff]  ;;  %v280_v3 = vld [vmem:[%s2029_s7 + $0x20] sm:$0xff]  ;;  %v282_v6 = vld [vmem:[%s2029_s7 + $0x30] sm:$0xff]  ;;  %s1759_s5 = smov 24   ;;  %s1760_s9 = smov 28   ;;  %vm927_vm12 = vcmask 293888  }
  0xa4   : > { %v295_v5 = vld [vmem:[%s2029_s7 + $0x98] sm:$0xff]  ;;  %v288_v29 = vld [vmem:[%s2029_s7 + $0x60] sm:$0xff]  ;;  %v289_v30 = vld [vmem:[%s2029_s7 + $0x68] sm:$0xff]  ;;  %s1761_s12 = smov 32   ;;  %s1269_s27 = sld [smem:[#allocation3 + $0x1]]  ;;  %vm1102_vm13 = vcmask 64512  }
  0xa5   : > { %v283_v7 = vld [vmem:[%s2029_s7 + $0x38] sm:$0xff]  ;;  %v2039_v8 = vstv %s271_s0  ;;  %v290_v35 = vld [vmem:[%s2029_s7 + $0x70] sm:$0x3]  ;;  %v276_v40 = vld [vmem:[%s2029_s7] sm:$0xff]  ;;  %s266_s2 = sand.u32 1, %s1708_s16   ;;  %s1291_s4 = sshll.u32 %s1728_s21, 4 }
  0xa6   : > { %v322_v9 = vmul.f32 %v2039_v8, %v291_v0  ;;  %v323_v10 = vmul.f32 %v2039_v8, %v292_v1  ;;  %v310_v11 = vmul.f32 %v2039_v8, %v279_v2  ;;  %v311_v12 = vmul.f32 %v2039_v8, %v280_v3  ;;  %v277_v41 = vld [vmem:[%s2029_s7 + $0x8] sm:$0xff]  ;;  %v278_v46 = vld [vmem:[%s2029_s7 + $0x10] sm:$0x3]  ;;  %s1268_s13 = sshll.u32 %s266_s2, 7  ;;  %s1287_s29 = sshll.u32 %s1732_s22, 5 }
  0xa7   : > { %v325_v13 = vmul.f32 %v2039_v8, %v294_v4  ;;  %v326_v14 = vmul.f32 %v2039_v8, %v295_v5  ;;  %v313_v15 = vmul.f32 %v2039_v8, %v282_v6  ;;  %v314_v16 = vmul.f32 %v2039_v8, %v283_v7  ;;  %v293_v51 = vld [vmem:[%s2029_s7 + $0x88] sm:$0x3]  ;;  %s2409_s15 = scalar_lea.vmem [#allocation11], %s1268_s13  ;;  %s1133_s21 = sadd.s32 %s1291_s4, %s1287_s29 }
  0xa8   : > { %v1351_v17 = vround.rtne.f32 %v322_v9  ;;  %v1352_v18 = vround.rtne.f32 %v323_v10  ;;  %v1339_v19 = vround.rtne.f32 %v310_v11  ;;  %v1340_v20 = vround.rtne.f32 %v311_v12  ;;  %v281_v60 = vld [vmem:[%s2029_s7 + $0x28] sm:$0x3]  ;;  %s1288_s22 = sshll.u32 %s1133_s21, 7  ;;  %s1136_s0 = sshll.u32 %s2409_s15, 4  ;;  %s2463_s0 = int_to_ptr.vmem [resolvable:$true] %s1136_s0 }
  0xa9   : > { %v1354_v21 = vround.rtne.f32 %v325_v13  ;;  %v1355_v22 = vround.rtne.f32 %v326_v14  ;;  %v1342_v23 = vround.rtne.f32 %v313_v15  ;;  %v1343_v24 = vround.rtne.f32 %v314_v16  ;;  %s2571_s3 = sld [smem:[#allocation17_spill]] }
  0xaa   : > { %v382_v25 = vmax.f32 %v1351_v17, -128.0  ;;  %v383_v26 = vmax.f32 %v1352_v18, -128.0  ;;  %v370_v27 = vmax.f32 %v1339_v19, -128.0  ;;  %v371_v28 = vmax.f32 %v1340_v20, -128.0 }
  0xab   : > { %v385_v31 = vmax.f32 %v1354_v21, -128.0  ;;  %v386_v32 = vmax.f32 %v1355_v22, -128.0  ;;  %v373_v33 = vmax.f32 %v1342_v23, -128.0  ;;  %v374_v34 = vmax.f32 %v1343_v24, -128.0 }
  0xac   : > { %v412_v36 = vmin.f32 %v382_v25, 127.0  ;;  %v413_v37 = vmin.f32 %v383_v26, 127.0  ;;  %v400_v38 = vmin.f32 %v370_v27, 127.0  ;;  %v401_v39 = vmin.f32 %v371_v28, 127.0 }
  0xad   : > { %v415_v42 = vmin.f32 %v385_v31, 127.0  ;;  %v416_v43 = vmin.f32 %v386_v32, 127.0  ;;  %v403_v44 = vmin.f32 %v373_v33, 127.0  ;;  %v404_v45 = vmin.f32 %v374_v34, 127.0 }
  0xae   : > { %v2055_v47 = vpack.c.bf16 %v413_v37, %v412_v36  ;;  %v2057_v48 = vpack.c.bf16 %v401_v39, %v400_v38  ;;  %v319_v49 = vmul.f32 %v2039_v8, %v288_v29  ;;  %v320_v50 = vmul.f32 %v2039_v8, %v289_v30 }
  0xaf   : > { %v2062_v52 = vpack.c.bf16 %v416_v43, %v415_v42  ;;  %v2064_v53 = vpack.c.bf16 %v404_v45, %v403_v44  ;;  %v321_v54 = vmul.f32 %v2039_v8, %v290_v35  ;;  %v307_v55 = vmul.f32 %v2039_v8, %v276_v40  ;;  %p2573_p4 = scmp.ne.s32.totalorder %s2571_s3, 0 }
  0xb0   : > { %669 = vrot.lane.b32.xlu1 %v2055_v47, %s1754_s28  ;;  %661 = vrot.lane.b32.xlu0 %v2057_v48, %s1754_s28  ;;  %v1348_v56 = vround.rtne.f32 %v319_v49  ;;  %v1349_v57 = vround.rtne.f32 %v320_v50  ;;  %v308_v58 = vmul.f32 %v2039_v8, %v277_v41  ;;  %v309_v59 = vmul.f32 %v2039_v8, %v278_v46  ;;  %449 = vst.msk [vmem:[#allocation2 + $0x8] sm:$0xff] %vm447_vm2, %v2057_v48 }
  0xb1   : > { %v1350_v61 = vround.rtne.f32 %v321_v54  ;;  %v1336_v62 = vround.rtne.f32 %v307_v55  ;;  %v324_v63 = vmul.f32 %v2039_v8, %v293_v51  ;;  %v618_v0 = vrot.slane %v2055_v47, 1  ;;  %v296_v54 = vld [vmem:[%s2029_s7 + $0xa0] sm:$0x3]  ;;  %450 = vst.msk [vmem:[#allocation2 + $0x10] sm:$0xff] %vm447_vm2, %v2064_v53  ;;  %453 = vst.msk [vmem:[#allocation2 + $0x28] sm:$0xff] %vm447_vm2, %v2055_v47 }
  0xb2   : > { %v379_v1 = vmax.f32 %v1348_v56, -128.0  ;;  %v380_v2 = vmax.f32 %v1349_v57, -128.0  ;;  %v1337_v3 = vround.rtne.f32 %v308_v58  ;;  %v1338_v4 = vround.rtne.f32 %v309_v59  ;;  %454 = vst.msk [vmem:[#allocation2 + $0x30] sm:$0xff] %vm447_vm2, %v2062_v52 }
  0xb3   : > { %v381_v5 = vmax.f32 %v1350_v61, -128.0  ;;  %v367_v6 = vmax.f32 %v1336_v62, -128.0  ;;  %v1353_v7 = vround.rtne.f32 %v324_v63  ;;  %v312_v9 = vmul.f32 %v2039_v8, %v281_v60 }
  0xb4   : > { %671 = vrot.lane.b32.xlu1 %v2062_v52, %s1754_s28  ;;  %663 = vrot.lane.b32.xlu0 %v2064_v53, %s1754_s28  ;;  %v409_v10 = vmin.f32 %v379_v1, 127.0  ;;  %v410_v11 = vmin.f32 %v380_v2, 127.0  ;;  %v368_v12 = vmax.f32 %v1337_v3, -128.0  ;;  %v369_v13 = vmax.f32 %v1338_v4, -128.0  ;;  %v284_v3 = vld [vmem:[%s2029_s7 + $0x40] sm:$0x3] }
  0xb5   : > { %v411_v14 = vmin.f32 %v381_v5, 127.0  ;;  %v397_v15 = vmin.f32 %v367_v6, 127.0  ;;  %v384_v16 = vmax.f32 %v1353_v7, -128.0  ;;  %v1341_v17 = vround.rtne.f32 %v312_v9 }
  0xb6   : > { %v2082_v18 = vpack.c.bf16 %v410_v11, %v409_v10  ;;  %v398_v19 = vmin.f32 %v368_v12, 127.0  ;;  %v399_v20 = vmin.f32 %v369_v13, 127.0  ;;  %v606_v21 = vrot.slane %v2057_v48, 1  ;;  %v297_v11 = vld [vmem:[%s2029_s7 + $0xa8] sm:$0xff] }
  0xb7   : > { %v436_v22 = vpack.c.bf16 %v411_v14, %v411_v14  ;;  %v414_v23 = vmin.f32 %v384_v16, 127.0  ;;  %v372_v24 = vmax.f32 %v1341_v17, -128.0  ;;  %v470_v25 = vshrl.u32 %v2057_v48, 16  ;;  %v298_v14 = vld [vmem:[%s2029_s7 + $0xb0] sm:$0xff] }
  0xb8   : > { %v615_v26 = vrot.slane %v2082_v18, 1  ;;  %v2087_v27 = vpack.c.bf16 %v398_v19, %v397_v15  ;;  %v428_v28 = vpack.c.bf16 %v399_v20, %v399_v20  ;;  %v472_v29 = vshll.u32 %v2057_v48, 16  ;;  %v285_v15 = vld [vmem:[%s2029_s7 + $0x48] sm:$0xff]  ;;  %v286_v20 = vld [vmem:[%s2029_s7 + $0x50] sm:$0xff]  ;;  %452 = vst.msk [vmem:[#allocation2 + $0x20] sm:$0xff] %vm447_vm2, %v2082_v18 }
  0xb9   : > { %v616_v30 = vrot.slane %v436_v22, 1  ;;  %v438_v31 = vpack.c.bf16 %v414_v23, %v414_v23  ;;  %v402_v32 = vmin.f32 %v372_v24, 127.0  ;;  %v518_v33 = vshrl.u32 %v2055_v47, 16 }
  0xba   : > { %v603_v34 = vrot.slane %v2087_v27, 1  ;;  %v604_v35 = vrot.slane %v428_v28, 1  ;;  %v474_v36 = vrot.slane %v472_v29, 1  ;;  %v458_v37 = vshrl.u32 %v2087_v27, 16  ;;  %448 = vst.msk [vmem:[#allocation2] sm:$0xff] %vm447_vm2, %v2087_v27 }
  0xbb   : > { %v2094_v38 = vsel %vm602_vm0, %v615_v26, %v616_v30  ;;  %v619_v39 = vrot.slane %v438_v31, 1  ;;  %v430_v40 = vpack.c.bf16 %v402_v32, %v402_v32  ;;  %v460_v41 = vshll.u32 %v2087_v27, 16 }
  0xbc   : > { %635 = vrot.lane.b32.xlu1 %v2094_v38, %s1755_s30  ;;  %v605_v42 = vsel %vm602_vm0, %v603_v34, %v604_v35  ;;  %v475_v43 = vor.u32 %v474_v36, %v470_v25  ;;  %v465_v44 = vshll.u32 %v428_v28, 16  ;;  %v520_v45 = vshll.u32 %v2055_v47, 16  ;;  %v299_v25 = vld [vmem:[%s2029_s7 + $0xb8] sm:$0x3] }
  0xbd   : > { %627 = vrot.lane.b32.xlu0 %v605_v42, %s1755_s30  ;;  %v2103_v46 = vsel %vm602_vm0, %v618_v0, %v619_v39  ;;  %v607_v49 = vrot.slane %v430_v40, 1  ;;  %v477_v50 = vshll.u32 %v430_v40, 16  ;;  %v462_v51 = vrot.slane %v460_v41, 1  ;;  %v287_v40 = vld [vmem:[%s2029_s7 + $0x58] sm:$0x3] }
  0xbe   : > { %v467_v55 = vrot.slane %v465_v44, 1  ;;  %v522_v56 = vrot.slane %v520_v45, 1  ;;  %v525_v57 = vshll.u32 %v438_v31, 16  ;;  %v506_v58 = vshrl.u32 %v2082_v18, 16 }
  0xbf   : > { %v2108_v59 = vsel %vm602_vm0, %v606_v21, %v607_v49  ;;  %v479_v60 = vrot.slane %v477_v50, 1  ;;  %v463_v61 = vor.u32 %v462_v51, %v458_v37  ;;  %v508_v62 = vshll.u32 %v2082_v18, 16 }
  0xc0   : > { %637 = vrot.lane.b32.xlu1 %v2103_v46, %s1755_s30  ;;  %v523_v63 = vor.u32 %v522_v56, %v518_v33  ;;  %v527_v0 = vrot.slane %v525_v57, 1  ;;  %v513_v1 = vshll.u32 %v436_v22, 16  ;;  %v327_v2 = vmul.f32 %v2039_v8, %v296_v54  ;;  %v300_v56 = vld [vmem:[%s2029_s7 + $0xc0] sm:$0xff] }
  0xc1   : > { %629 = vrot.lane.b32.xlu0 %v2108_v59, %s1755_s30  ;;  %v480_v4 = vsel %vm456_vm1, %v475_v43, %v479_v60  ;;  %v510_v5 = vrot.slane %v508_v62, 1  ;;  %v468_v6 = vsel %vm456_vm1, %v463_v61, %v467_v55  ;;  %v532_v10 = vshll.u32 %v2062_v52, 16 }
  0xc2   : > { %v515_v7 = vrot.slane %v513_v1, 1  ;;  %v1356_v9 = vround.rtne.f32 %v327_v2  ;;  %v315_v13 = vmul.f32 %v2039_v8, %v284_v3  ;;  %v2126_v16 = vsel %vm456_vm1, %v523_v63, %v527_v0 }
  0xc3   : > { %v511_v12 = vor.u32 %v510_v5, %v506_v58  ;;  %v530_v19 = vshrl.u32 %v2062_v52, 16  ;;  %v534_v21 = vrot.slane %v532_v10, 1  ;;  %v484_v23 = vshll.u32 %v2064_v53, 16 }
  0xc4   : > { %555 = vrot.lane.b32.xlu1 %v480_v4, %s1756_s10  ;;  %v387_v17 = vmax.f32 %v1356_v9, -128.0  ;;  %v1344_v22 = vround.rtne.f32 %v315_v13  ;;  %v328_v24 = vmul.f32 %v2039_v8, %v297_v11  ;;  %v329_v29 = vmul.f32 %v2039_v8, %v298_v14 }
  0xc5   : > { %553 = vrot.lane.b32.xlu0 %v468_v6, %s1756_s10  ;;  %v2135_v26 = vsel %vm456_vm1, %v511_v12, %v515_v7  ;;  %v316_v30 = vmul.f32 %v2039_v8, %v285_v15  ;;  %v482_v32 = vshrl.u32 %v2064_v53, 16  ;;  %v317_v34 = vmul.f32 %v2039_v8, %v286_v20  ;;  %v301_v7 = vld [vmem:[%s2029_s7 + $0xc8] sm:$0xff]  ;;  %v302_v15 = vld [vmem:[%s2029_s7 + $0xd0] sm:$0x3] }
  0xc6   : > { %v417_v28 = vmin.f32 %v387_v17, 127.0  ;;  %v375_v31 = vmax.f32 %v1344_v22, -128.0  ;;  %v1357_v33 = vround.rtne.f32 %v328_v24  ;;  %v1358_v36 = vround.rtne.f32 %v329_v29  ;;  %v304_v29 = vld [vmem:[%s2029_s7 + $0xe0] sm:$0xff] }
  0xc7   : > { %v1345_v37 = vround.rtne.f32 %v316_v30  ;;  %v330_v39 = vmul.f32 %v2039_v8, %v299_v25  ;;  %v486_v42 = vrot.slane %v484_v23, 1  ;;  %v1346_v44 = vround.rtne.f32 %v317_v34 }
  0xc8   : > { %563 = vrot.lane.b32.xlu1 %v2126_v16, %s1756_s10  ;;  %v440_v35 = vpack.c.bf16 %v417_v28, %v417_v28  ;;  %v405_v41 = vmin.f32 %v375_v31, 127.0  ;;  %v388_v43 = vmax.f32 %v1357_v33, -128.0  ;;  %v535_v45 = vor.u32 %v534_v21, %v530_v19  ;;  %v303_v28 = vld [vmem:[%s2029_s7 + $0xd8] sm:$0xff] }
  0xc9   : > { %561 = vrot.lane.b32.xlu0 %v2135_v26, %s1756_s10  ;;  %v389_v50 = vmax.f32 %v1358_v36, -128.0  ;;  %v1359_v54 = vround.rtne.f32 %v330_v39  ;;  %v318_v55 = vmul.f32 %v2039_v8, %v287_v40  ;;  %v376_v58 = vmax.f32 %v1345_v37, -128.0  ;;  %v305_v37 = vld [vmem:[%s2029_s7 + $0xe8] sm:$0x3] }
  0xca   : > { %v537_v49 = vshll.u32 %v440_v35, 16  ;;  %v432_v51 = vpack.c.bf16 %v405_v41, %v405_v41  ;;  %v377_v60 = vmax.f32 %v1346_v44, -128.0  ;;  %v487_v61 = vor.u32 %v486_v42, %v482_v32 }
  0xcb   : > { %v418_v63 = vmin.f32 %v388_v43, 127.0  ;;  %v419_v1 = vmin.f32 %v389_v50, 127.0  ;;  %v390_v2 = vmax.f32 %v1359_v54, -128.0  ;;  %v331_v3 = vmul.f32 %v2039_v8, %v300_v56 }
  0xcc   : > { %714 = vrot.lane.b32.xlu1 %v2126_v16, %s1757_s6  ;;  %v539_v57 = vrot.slane %v537_v49, 1  ;;  %v489_v62 = vshll.u32 %v432_v51, 16  ;;  %v1347_v6 = vround.rtne.f32 %v318_v55  ;;  %v621_v9 = vrot.slane %v2062_v52, 1 }
  0xcd   : > { %706 = vrot.lane.b32.xlu0 %v480_v4, %s1757_s6  ;;  %v406_v4 = vmin.f32 %v376_v58, 127.0  ;;  %v407_v10 = vmin.f32 %v377_v60, 127.0  ;;  %v622_v12 = vrot.slane %v440_v35, 1  ;;  %v609_v13 = vrot.slane %v2064_v53, 1 }
  0xce   : > { %v2153_v0 = vsel %vm456_vm1, %v535_v45, %v539_v57  ;;  %v491_v5 = vrot.slane %v489_v62, 1  ;;  %v610_v14 = vrot.slane %v432_v51, 1  ;;  %v2167_v17 = vpack.c.bf16 %v419_v1, %v418_v63 }
  0xcf   : > { %v420_v19 = vmin.f32 %v390_v2, 127.0  ;;  %v332_v20 = vmul.f32 %v2039_v8, %v301_v7  ;;  %v378_v21 = vmax.f32 %v1347_v6, -128.0  ;;  %v1360_v22 = vround.rtne.f32 %v331_v3 }
  0xd0   : > { %716 = vrot.lane.b32.xlu1 %v2153_v0, %s1757_s6  ;;  %v2161_v11 = vsel %vm456_vm1, %v487_v61, %v491_v5  ;;  %v2172_v23 = vpack.c.bf16 %v407_v10, %v406_v4  ;;  %v333_v25 = vmul.f32 %v2039_v8, %v302_v15  ;;  %v2178_v30 = vsel %vm602_vm0, %v621_v9, %v622_v12 }
  0xd1   : > { %708 = vrot.lane.b32.xlu0 %v2161_v11, %s1757_s6  ;;  %v1361_v24 = vround.rtne.f32 %v332_v20  ;;  %v2181_v31 = vsel %vm602_vm0, %v609_v13, %v610_v14  ;;  %v391_v32 = vmax.f32 %v1360_v22, -128.0  ;;  %v2185_v33 = vpack.c.bf16 %v420_v19, %v420_v19  ;;  %455 = vst.msk [vmem:[#allocation2 + $0x38] sm:$0xff] %vm447_vm2, %v2167_v17 }
  0xd2   : > { %v544_v34 = vshll.u32 %v2167_v17, 16  ;;  %v1362_v36 = vround.rtne.f32 %v333_v25  ;;  %v408_v39 = vmin.f32 %v378_v21, 127.0  ;;  %v334_v41 = vmul.f32 %v2039_v8, %v303_v28  ;;  %451 = vst.msk [vmem:[#allocation2 + $0x18] sm:$0xff] %vm447_vm2, %v2172_v23 }
  0xd3   : > { %v392_v35 = vmax.f32 %v1361_v24, -128.0  ;;  %v421_v40 = vmin.f32 %v391_v32, 127.0  ;;  %v335_v42 = vmul.f32 %v2039_v8, %v304_v29  ;;  %v542_v43 = vshrl.u32 %v2167_v17, 16 }
  0xd4   : > { %751 = vrot.lane.b32.xlu1 %v2103_v46, %s1758_s18  ;;  %v393_v45 = vmax.f32 %v1362_v36, -128.0  ;;  %v1363_v49 = vround.rtne.f32 %v334_v41  ;;  %v336_v51 = vmul.f32 %v2039_v8, %v305_v37  ;;  %v546_v54 = vrot.slane %v544_v34, 1  ;;  %v1512_v36 = vld [vmem:[#allocation8] sm:$0xff]  }
  0xd5   : > { %743 = vrot.lane.b32.xlu0 %v2108_v59, %s1758_s18  ;;  %v496_v59 = vshll.u32 %v2172_v23, 16  ;;  %v422_v44 = vmin.f32 %v392_v35, 127.0  ;;  %v1364_v50 = vround.rtne.f32 %v335_v42  ;;  %v549_v55 = vshll.u32 %v2185_v33, 16  ;;  %1303 = vmatprep.subr.bf16.mxu0 %v1512_v36 }
  0xd6   : > { %v423_v57 = vmin.f32 %v393_v45, 127.0  ;;  %v2209_v8 = vpack.c.bf16 %v408_v39, %v408_v39  ;;  %v394_v58 = vmax.f32 %v1363_v49, -128.0  ;;  %v1365_v61 = vround.rtne.f32 %v336_v51  ;;  %1325 = vmatprep.subr.bf16.mxu1 %v1512_v36  ;;  %1304 = vmatpush3.bf16.msra.mxu0 %v1512_v36 }
  0xd7   : > { %v2199_v56 = vpack.c.bf16 %v422_v44, %v421_v40  ;;  %v395_v60 = vmax.f32 %v1364_v50, -128.0  ;;  %v494_v1 = vshrl.u32 %v2172_v23, 16  ;;  %v498_v6 = vrot.slane %v496_v59, 1  ;;  %1328 = vmatpush3.bf16.msra.mxu1 %v1512_v36  ;;  %v1513_v59 = vld [vmem:[#allocation8 + $0x8] sm:$0xff]  }
  0xd8   : > { %753 = vrot.lane.b32.xlu1 %v2178_v30, %s1758_s18  ;;  %v444_v48 = vpack.c.bf16 %v423_v57, %v423_v57  ;;  %v424_v2 = vmin.f32 %v394_v58, 127.0  ;;  %v396_v5 = vmax.f32 %v1365_v61, -128.0  ;;  %v501_v10 = vshll.u32 %v2209_v8, 16  ;;  %1305 = vmatprep.subr.bf16.mxu0 %v1513_v59  ;;  %v1514_v44 = vld [vmem:[#allocation8 + $0x10] ss:$0 sps:$4 sm:$0x33]  }
  0xd9   : > { %745 = vrot.lane.b32.xlu0 %v2181_v31, %s1758_s18  ;;  %v695_v27 = vshrl.u32 %v2199_v56, 16  ;;  %v697_v62 = vshll.u32 %v2199_v56, 16  ;;  %v740_v63 = vrot.slane %v2199_v56, 1  ;;  %v425_v3 = vmin.f32 %v395_v60, 127.0  ;;  %1326 = vmatprep.subr.bf16.mxu1 %v1513_v59 }
  0xda   : > { %v702_v9 = vshll.u32 %v444_v48, 16  ;;  %v741_v4 = vrot.slane %v444_v48, 1  ;;  %v426_v13 = vmin.f32 %v396_v5, 127.0  ;;  %v551_v14 = vrot.slane %v549_v55, 1  ;;  %1306 = vmatpush3.bf16.msra.mxu0 %v1513_v59 }
  0xdb   : > { %v699_v7 = vrot.slane %v697_v62, 1  ;;  %v2220_v12 = vpack.c.bf16 %v425_v3, %v424_v2  ;;  %v499_v25 = vor.u32 %v498_v6, %v494_v1  ;;  %v503_v29 = vrot.slane %v501_v10, 1  ;;  %1329 = vmatpush3.bf16.msra.mxu1 %v1513_v59  ;;  %1331 = vmatprep.subr.msk.bf16.mxu0 %vm952_vm3, %v1514_v44 }
  0xdc   : > { %785 = vrot.lane.b32.xlu1 %v2062_v52, %s1759_s5  ;;  %v547_v52 = vor.u32 %v546_v54, %v542_v43  ;;  %v704_v19 = vrot.slane %v702_v9, 1  ;;  %v2225_v20 = vsel %vm602_vm0, %v740_v63, %v741_v4  ;;  %v624_v45 = vrot.slane %v2167_v17, 1  ;;  %1332 = vmatprep.subr.msk.bf16.mxu1 %vm952_vm3, %v1514_v44 }
  0xdd   : > { %777 = vrot.lane.b32.xlu0 %v2064_v53, %s1759_s5  ;;  %v700_v15 = vor.u32 %v699_v7, %v695_v27  ;;  %v446_v53 = vpack.c.bf16 %v426_v13, %v426_v13  ;;  %v811_v21 = vshrl.u32 %v2220_v12, 16  ;;  %v813_v22 = vshll.u32 %v2220_v12, 16 }
  0xde   : > { %v856_v24 = vrot.slane %v2220_v12, 1  ;;  %v552_v37 = vsel %vm456_vm1, %v547_v52, %v551_v14  ;;  %v504_v42 = vsel %vm456_vm1, %v499_v25, %v503_v29  ;;  %v625_v49 = vrot.slane %v2185_v33, 1 }
  0xdf   : > { %v2233_v28 = vsel %vm456_vm1, %v700_v15, %v704_v19  ;;  %v815_v32 = vrot.slane %v813_v22, 1  ;;  %v818_v34 = vshll.u32 %v446_v53, 16  ;;  %v857_v35 = vrot.slane %v446_v53, 1 }
  0xe0   : > { %787 = vrot.lane.b32.xlu1 %v2167_v17, %s1759_s5  ;;  %v954_v50 = vsel %vm952_vm3, %v1514_v44, 0  ;;  %v612_v51 = vrot.slane %v2172_v23, 1  ;;  %v613_v54 = vrot.slane %v2209_v8, 1  ;;  %v626_v55 = vsel %vm602_vm0, %v624_v45, %v625_v49 }
  0xe1   : > { %779 = vrot.lane.b32.xlu0 %v2172_v23, %s1759_s5  ;;  %v816_v39 = vor.u32 %v815_v32, %v811_v21  ;;  %v820_v40 = vrot.slane %v818_v34, 1  ;;  %v2239_v41 = vsel %vm602_vm0, %v856_v24, %v857_v35  ;;  %1308 = vmatpush3.bf16.msra.mxu0 %v954_v50 }
  0xe2   : > { %1330 = vmatpush3.bf16.msra.mxu1 %v954_v50  ;;  %v614_v33 = vsel %vm602_vm0, %v612_v51, %v613_v54 }
  0xe3   : > { %v821_v43 = vsel %vm456_vm1, %v816_v39, %v820_v40 }
  0xe4   : > { %830 = vrot.lane.b32.xlu1 %v2153_v0, %s1760_s9 }
  0xe5   : > { %822 = vrot.lane.b32.xlu0 %v2161_v11, %s1760_s9 }
  0xe8   : > { %832 = vrot.lane.b32.xlu1 %v552_v37, %s1760_s9 }
  0xe9   : > { %824 = vrot.lane.b32.xlu0 %v504_v42, %s1760_s9 }
  0xec   : > { %867 = vrot.lane.b32.xlu1 %v2178_v30, %s1761_s12 }
  0xed   : > { %859 = vrot.lane.b32.xlu0 %v2181_v31, %s1761_s12 }
  0xf0   : > { %565 = vrot.lane.b32.xlu1 %v2153_v0, %s1756_s10 }
  0xf1   : > { %557 = vrot.lane.b32.xlu0 %v2161_v11, %s1756_s10 }
  0xf4   : > { %869 = vrot.lane.b32.xlu1 %v626_v55, %s1761_s12 }
  0xf5   : > { %861 = vrot.lane.b32.xlu0 %v614_v33, %s1761_s12 }
  0xf8   : > { %567 = vrot.lane.b32.xlu1 %v552_v37, %s1756_s10 }
  0xf9   : > { %559 = vrot.lane.b32.xlu0 %v504_v42, %s1756_s10  ;;  %s2572_s10 = sld [smem:[#allocation22_spill]] }
  0xfc   : > { %639 = vrot.lane.b32.xlu1 %v2178_v30, %s1755_s30 }
  0xfd   : > { %631 = vrot.lane.b32.xlu0 %v2181_v31, %s1755_s30 }
 0x100   : > { %641 = vrot.lane.b32.xlu1 %v626_v55, %s1755_s30 }
 0x101   : > { %633 = vrot.lane.b32.xlu0 %v614_v33, %s1755_s30 }
 0x104   : > { %673 = vrot.lane.b32.xlu1 %v2167_v17, %s1754_s28 }
 0x105   : > { %665 = vrot.lane.b32.xlu0 %v2172_v23, %s1754_s28 }
 0x108   : > { %675 = vrot.lane.b32.xlu1 %v2199_v56, %s1754_s28 }
 0x109   : > { %667 = vrot.lane.b32.xlu0 %v2082_v18, %s1754_s28 }
 0x10c   : > { %718 = vrot.lane.b32.xlu1 %v552_v37, %s1757_s6 }
 0x10d   : > { %710 = vrot.lane.b32.xlu0 %v504_v42, %s1757_s6 }
 0x110   : > { %720 = vrot.lane.b32.xlu1 %v2233_v28, %s1757_s6 }
 0x111   : > { %712 = vrot.lane.b32.xlu0 %v2135_v26, %s1757_s6  ;;  %s2457_s6 = scalar_lea.hbm %s2572_s10, %s1288_s22 }
 0x114   : > { %755 = vrot.lane.b32.xlu1 %v626_v55, %s1758_s18 }
 0x115   : > { %747 = vrot.lane.b32.xlu0 %v614_v33, %s1758_s18 }
 0x118   : > { %757 = vrot.lane.b32.xlu1 %v2225_v20, %s1758_s18 }
 0x119   : > { %749 = vrot.lane.b32.xlu0 %v2094_v38, %s1758_s18  ;;  %s2471_s18 = scalar_lea.sflag [#allocation5], %s266_s2 }
 0x11c   : > { %789 = vrot.lane.b32.xlu1 %v2199_v56, %s1759_s5 }
 0x11d   : > { %781 = vrot.lane.b32.xlu0 %v2082_v18, %s1759_s5 }
 0x120   : > { %791 = vrot.lane.b32.xlu1 %v2220_v12, %s1759_s5 }
 0x121   : > { %783 = vrot.lane.b32.xlu0 %v2055_v47, %s1759_s5  ;;  %s1614_s5 = scalar_lea.vmem %s2463_s0, 2048 }
 0x122   : > { %v670_v0 = vpop.permute.xlu1 %669  ;;  %v662_v11 = vpop.permute.xlu0 %661  ;;  %p1615_p12 = scmp.ne.s32.totalorder %s2463_s0, %s1614_s5 }
 0x124   : > { %834 = vrot.lane.b32.xlu1 %v2233_v28, %s1760_s9  ;;  %p1616_p5 = pnand %p1615_p12, %p2573_p4 }
 0x125   : > { %826 = vrot.lane.b32.xlu0 %v2135_v26, %s1760_s9 }
 0x126   : > { %v672_v17 = vpop.permute.xlu1 %671  ;;  %v664_v23 = vpop.permute.xlu0 %663  ;;  %p1617_p6 = pneg %p1616_p5 }
 0x128   : > { %836 = vrot.lane.b32.xlu1 %v821_v43, %s1760_s9 }
 0x129   : > { %828 = vrot.lane.b32.xlu0 %v2126_v16, %s1760_s9  ;;  %s1762_s9 = smov [#allocation11]  }
 0x12c   : > { %871 = vrot.lane.b32.xlu1 %v2225_v20, %s1761_s12 }
 0x12d   : > { %863 = vrot.lane.b32.xlu0 %v2094_v38, %s1761_s12 }
 0x12e   : > { %v636_v47 = vpop.permute.xlu1 %635 }
 0x12f   : > { %v628_v18 = vpop.permute.xlu0 %627 }
 0x130   : > { %873 = vrot.lane.b32.xlu1 %v2239_v41, %s1761_s12 }
 0x131   : > { %865 = vrot.lane.b32.xlu0 %v2103_v46, %s1761_s12  ;;  %s1618_s12 = sshll.u32 %s1762_s9, 4  ;;  %s1619_s12 = int_to_ptr.vmem [resolvable:$false] %s1618_s12 }
 0x132   : > { %v638_v26 = vpop.permute.xlu1 %637  ;;  %p1621_p13 = scmp.lt.s32.totalorder %s2463_s0, %s1619_s12 }
 0x133   : > { %v630_v30 = vpop.permute.xlu0 %629 }
 0x136   : > { %v556_v31 = vpop.permute.xlu1 %555 }
 0x137   : > { %579 = vst.msk [vmem:[#allocation2 + $0x8] sm:$0xff] %vm577_vm4, %v556_v31  ;;  %v554_v16 = vpop.permute.xlu0 %553  ;;  %v2386_v31 = vld [vmem:[#allocation10] ss:$0 sm:$0xff] }
 0x138   : > { %653 = vst.msk [vmem:[#allocation2 + $0x8] sm:$0xff] %vm651_vm5, %v630_v30 }
 0x139   : > { %578 = vst.msk [vmem:[#allocation2] sm:$0xff] %vm577_vm4, %v554_v16  ;;  %v2389_v16 = vstv %s1269_s27  ;;  %s1620_s27 = scalar_lea.vmem %s1619_s12, 4096 }
 0x13a   : > { %652 = vst.msk [vmem:[#allocation2] sm:$0xff] %vm651_vm5, %v628_v18  ;;  %v564_v38 = vpop.permute.xlu1 %563  ;;  %p1622_p8 = scmp.lt.s32.totalorder %s1620_s27, %s1614_s5 }
 0x13b   : > { %687 = vst.msk [vmem:[#allocation2 + $0x8] sm:$0xff] %vm685_vm6, %v664_v23  ;;  %686 = vst.msk [vmem:[#allocation2] sm:$0xff] %vm685_vm6, %v662_v11  ;;  %v562_v46 = vpop.permute.xlu0 %561 }
 0x13c   : > { %583 = vst.msk [vmem:[#allocation2 + $0x28] sm:$0xff] %vm577_vm4, %v564_v38  ;;  %582 = vst.msk [vmem:[#allocation2 + $0x20] sm:$0xff] %vm577_vm4, %v562_v46  ;;  %p1623_p10 = por %p1622_p8, %p1621_p13 }
 0x13d   : > { %657 = vst.msk [vmem:[#allocation2 + $0x28] sm:$0xff] %vm651_vm5, %v638_v26  ;;  %656 = vst.msk [vmem:[#allocation2 + $0x20] sm:$0xff] %vm651_vm5, %v636_v47 }
 0x13e   : > { %691 = vst.msk [vmem:[#allocation2 + $0x28] sm:$0xff] %vm685_vm6, %v672_v17  ;;  %v715_v56 = vpop.permute.xlu1 %714  ;;  %690 = vst.msk [vmem:[#allocation2 + $0x20] sm:$0xff] %vm685_vm6, %v670_v0  ;;  %p1624_p0 = pnand %p1623_p10, %p1617_p6 }
 0x13f   : > { %735 = vst.msk [vmem:[#allocation2 + $0x20] sm:$0xff] %vm730_vm7, %v715_v56  ;;  %v707_v57 = vpop.permute.xlu0 %706 }
 0x140   : > { %731 = vst.msk [vmem:[#allocation2] sm:$0xff] %vm730_vm7, %v707_v57 }
 0x142   : > { %v717_v8 = vpop.permute.xlu1 %716 }
 0x143   : > { %736 = vst.msk [vmem:[#allocation2 + $0x28] sm:$0xff] %vm730_vm7, %v717_v8  ;;  %v709_v58 = vpop.permute.xlu0 %708 }
 0x144   : > { %732 = vst.msk [vmem:[#allocation2 + $0x8] sm:$0xff] %vm730_vm7, %v709_v58 }
 0x146   : > { %v752_v60 = vpop.permute.xlu1 %751 }
 0x147   : > { %772 = vst.msk [vmem:[#allocation2 + $0x20] sm:$0xff] %vm767_vm8, %v752_v60  ;;  %v744_v61 = vpop.permute.xlu0 %743 }
 0x148   : > { %768 = vst.msk [vmem:[#allocation2] sm:$0xff] %vm767_vm8, %v744_v61 }
 0x14a   : > { %v754_v48 = vpop.permute.xlu1 %753 }
 0x14b   : > { %773 = vst.msk [vmem:[#allocation2 + $0x28] sm:$0xff] %vm767_vm8, %v754_v48  ;;  %v746_v27 = vpop.permute.xlu0 %745 }
 0x14c   : > { %769 = vst.msk [vmem:[#allocation2 + $0x8] sm:$0xff] %vm767_vm8, %v746_v27 }
 0x14e   : > { %v786_v62 = vpop.permute.xlu1 %785 }
 0x14f   : > { %806 = vst.msk [vmem:[#allocation2 + $0x20] sm:$0xff] %vm801_vm9, %v786_v62  ;;  %v778_v63 = vpop.permute.xlu0 %777 }
 0x150   : > { %802 = vst.msk [vmem:[#allocation2] sm:$0xff] %vm801_vm9, %v778_v63 }
 0x152   : > { %v788_v1 = vpop.permute.xlu1 %787 }
 0x153   : > { %807 = vst.msk [vmem:[#allocation2 + $0x28] sm:$0xff] %vm801_vm9, %v788_v1  ;;  %v780_v2 = vpop.permute.xlu0 %779 }
 0x154   : > { %803 = vst.msk [vmem:[#allocation2 + $0x8] sm:$0xff] %vm801_vm9, %v780_v2 }
 0x156   : > { %v831_v3 = vpop.permute.xlu1 %830 }
 0x157   : > { %851 = vst.msk [vmem:[#allocation2 + $0x20] sm:$0xff] %vm846_vm10, %v831_v3  ;;  %v823_v5 = vpop.permute.xlu0 %822 }
 0x158   : > { %847 = vst.msk [vmem:[#allocation2] sm:$0xff] %vm846_vm10, %v823_v5 }
 0x15a   : > { %v833_v6 = vpop.permute.xlu1 %832 }
 0x15b   : > { %852 = vst.msk [vmem:[#allocation2 + $0x28] sm:$0xff] %vm846_vm10, %v833_v6  ;;  %v825_v7 = vpop.permute.xlu0 %824 }
 0x15c   : > { %848 = vst.msk [vmem:[#allocation2 + $0x8] sm:$0xff] %vm846_vm10, %v825_v7 }
 0x15e   : > { %v868_v9 = vpop.permute.xlu1 %867 }
 0x15f   : > { %888 = vst.msk [vmem:[#allocation2 + $0x20] sm:$0xff] %vm883_vm11, %v868_v9  ;;  %v860_v4 = vpop.permute.xlu0 %859 }
 0x160   : > { %884 = vst.msk [vmem:[#allocation2] sm:$0xff] %vm883_vm11, %v860_v4 }
 0x162   : > { %v566_v52 = vpop.permute.xlu1 %565 }
 0x163   : > { %584 = vst.msk [vmem:[#allocation2 + $0x30] sm:$0xff] %vm577_vm4, %v566_v52  ;;  %v558_v10 = vpop.permute.xlu0 %557 }
 0x164   : > { %580 = vst.msk [vmem:[#allocation2 + $0x10] sm:$0xff] %vm577_vm4, %v558_v10 }
 0x166   : > { %v870_v12 = vpop.permute.xlu1 %869  ;;  %v896_v13 = vld [vmem:[#allocation2 + $0x20] sm:$0xff] }
 0x167   : > { %889 = vst.msk [vmem:[#allocation2 + $0x28] sm:$0xff] %vm883_vm11, %v870_v12  ;;  %1317 = vmatprep.mubr.msk.bf16.mxu1 %vm927_vm12, %v896_v13  ;;  %v862_v14 = vpop.permute.xlu0 %861  ;;  %v892_v15 = vld [vmem:[#allocation2] sm:$0xff] }
 0x168   : > { %885 = vst.msk [vmem:[#allocation2 + $0x8] sm:$0xff] %vm883_vm11, %v862_v14  ;;  %1309 = vmatprep.mubr.msk.bf16.mxu0 %vm927_vm12, %v892_v15 }
 0x16a   : > { %v568_v19 = vpop.permute.xlu1 %567 }
 0x16b   : > { %585 = vst.msk [vmem:[#allocation2 + $0x38] sm:$0xff] %vm577_vm4, %v568_v19  ;;  %v560_v20 = vpop.permute.xlu0 %559 }
 0x16c   : > { %581 = vst.msk [vmem:[#allocation2 + $0x18] sm:$0xff] %vm577_vm4, %v560_v20 }
 0x16e   : > { %v640_v53 = vpop.permute.xlu1 %639  ;;  %v897_v21 = vld [vmem:[#allocation2 + $0x28] sm:$0xff] }
 0x16f   : > { %658 = vst.msk [vmem:[#allocation2 + $0x30] sm:$0xff] %vm651_vm5, %v640_v53  ;;  %1318 = vmatmul.mubr.msk.bf16.vlgmr.msra.gmra.mrb[0].mxu1 %vm927_vm12, %v897_v21  ;;  %v632_v22 = vpop.permute.xlu0 %631  ;;  %v893_v24 = vld [vmem:[#allocation2 + $0x8] sm:$0xff] }
 0x170   : > { %654 = vst.msk [vmem:[#allocation2 + $0x10] sm:$0xff] %vm651_vm5, %v632_v22  ;;  %1310 = vmatmul.mubr.msk.bf16.vlgmr.msra.gmra.mrb[0].mxu0 %vm927_vm12, %v893_v24 }
 0x172   : > { %v642_v25 = vpop.permute.xlu1 %641 }
 0x173   : > { %659 = vst.msk [vmem:[#allocation2 + $0x38] sm:$0xff] %vm651_vm5, %v642_v25  ;;  %v634_v28 = vpop.permute.xlu0 %633 }
 0x174   : > { %655 = vst.msk [vmem:[#allocation2 + $0x18] sm:$0xff] %vm651_vm5, %v634_v28 }
 0x176   : > { %v674_v29 = vpop.permute.xlu1 %673 }
 0x177   : > { %692 = vst.msk [vmem:[#allocation2 + $0x30] sm:$0xff] %vm685_vm6, %v674_v29  ;;  %v666_v32 = vpop.permute.xlu0 %665 }
 0x178   : > { %688 = vst.msk [vmem:[#allocation2 + $0x10] sm:$0xff] %vm685_vm6, %v666_v32 }
 0x17a   : > { %v676_v34 = vpop.permute.xlu1 %675 }
 0x17b   : > { %693 = vst.msk [vmem:[#allocation2 + $0x38] sm:$0xff] %vm685_vm6, %v676_v34  ;;  %v668_v35 = vpop.permute.xlu0 %667 }
 0x17c   : > { %689 = vst.msk [vmem:[#allocation2 + $0x18] sm:$0xff] %vm685_vm6, %v668_v35 }
 0x17e   : > { %v719_v36 = vpop.permute.xlu1 %718 }
 0x17f   : > { %737 = vst.msk [vmem:[#allocation2 + $0x30] sm:$0xff] %vm730_vm7, %v719_v36  ;;  %v711_v37 = vpop.permute.xlu0 %710 }
 0x180   : > { %733 = vst.msk [vmem:[#allocation2 + $0x10] sm:$0xff] %vm730_vm7, %v711_v37 }
 0x182   : > { %v721_v39 = vpop.permute.xlu1 %720 }
 0x183   : > { %738 = vst.msk [vmem:[#allocation2 + $0x38] sm:$0xff] %vm730_vm7, %v721_v39  ;;  %v713_v40 = vpop.permute.xlu0 %712 }
 0x184   : > { %734 = vst.msk [vmem:[#allocation2 + $0x18] sm:$0xff] %vm730_vm7, %v713_v40 }
 0x186   : > { %v756_v41 = vpop.permute.xlu1 %755 }
 0x187   : > { %774 = vst.msk [vmem:[#allocation2 + $0x30] sm:$0xff] %vm767_vm8, %v756_v41  ;;  %v748_v42 = vpop.permute.xlu0 %747 }
 0x188   : > { %770 = vst.msk [vmem:[#allocation2 + $0x10] sm:$0xff] %vm767_vm8, %v748_v42 }
 0x18a   : > { %v758_v43 = vpop.permute.xlu1 %757 }
 0x18b   : > { %775 = vst.msk [vmem:[#allocation2 + $0x38] sm:$0xff] %vm767_vm8, %v758_v43  ;;  %v750_v59 = vpop.permute.xlu0 %749 }
 0x18c   : > { %771 = vst.msk [vmem:[#allocation2 + $0x18] sm:$0xff] %vm767_vm8, %v750_v59 }
 0x18e   : > { %v790_v44 = vpop.permute.xlu1 %789 }
 0x18f   : > { %808 = vst.msk [vmem:[#allocation2 + $0x30] sm:$0xff] %vm801_vm9, %v790_v44  ;;  %v782_v45 = vpop.permute.xlu0 %781 }
 0x190   : > { %804 = vst.msk [vmem:[#allocation2 + $0x10] sm:$0xff] %vm801_vm9, %v782_v45 }
 0x192   : > { %v792_v49 = vpop.permute.xlu1 %791 }
 0x193   : > { %809 = vst.msk [vmem:[#allocation2 + $0x38] sm:$0xff] %vm801_vm9, %v792_v49  ;;  %v784_v50 = vpop.permute.xlu0 %783 }
 0x194   : > { %805 = vst.msk [vmem:[#allocation2 + $0x18] sm:$0xff] %vm801_vm9, %v784_v50 }
 0x196   : > { %v835_v51 = vpop.permute.xlu1 %834 }
 0x197   : > { %853 = vst.msk [vmem:[#allocation2 + $0x30] sm:$0xff] %vm846_vm10, %v835_v51  ;;  %v827_v54 = vpop.permute.xlu0 %826 }
 0x198   : > { %849 = vst.msk [vmem:[#allocation2 + $0x10] sm:$0xff] %vm846_vm10, %v827_v54 }
 0x19a   : > { %v837_v55 = vpop.permute.xlu1 %836 }
 0x19b   : > { %854 = vst.msk [vmem:[#allocation2 + $0x38] sm:$0xff] %vm846_vm10, %v837_v55  ;;  %v829_v33 = vpop.permute.xlu0 %828 }
 0x19c   : > { %850 = vst.msk [vmem:[#allocation2 + $0x18] sm:$0xff] %vm846_vm10, %v829_v33 }
 0x19e   : > { %v872_v0 = vpop.permute.xlu1 %871 }
 0x19f   : > { %890 = vst.msk [vmem:[#allocation2 + $0x30] sm:$0xff] %vm883_vm11, %v872_v0  ;;  %v864_v11 = vpop.permute.xlu0 %863 }
 0x1a0   : > { %886 = vst.msk [vmem:[#allocation2 + $0x10] sm:$0xff] %vm883_vm11, %v864_v11 }
 0x1a2   : > { %v874_v17 = vpop.permute.xlu1 %873 }
 0x1a3   : > { %891 = vst.msk [vmem:[#allocation2 + $0x38] sm:$0xff] %vm883_vm11, %v874_v17  ;;  %v866_v23 = vpop.permute.xlu0 %865 }
 0x1a4   : > { %887 = vst.msk [vmem:[#allocation2 + $0x18] sm:$0xff] %vm883_vm11, %v866_v23 }
 0x1a6   : > { %v898_v47 = vld [vmem:[#allocation2 + $0x30] sm:$0xff] }
 0x1a7   : > { %1321 = vmatprep.mubr.msk.bf16.mxu1 %vm927_vm12, %v898_v47  ;;  %v894_v18 = vld [vmem:[#allocation2 + $0x10] sm:$0xff] }
 0x1a8   : > { %1313 = vmatprep.mubr.msk.bf16.mxu0 %vm927_vm12, %v894_v18 }
 0x1aa   : > { %v899_v26 = vld [vmem:[#allocation2 + $0x38] sm:$0xff] }
 0x1ab   : > { %1322 = vmatmul.mubr.msk.bf16.gmra.mrb[4].mxu1 %vm927_vm12, %v899_v26  ;;  %v895_v30 = vld [vmem:[#allocation2 + $0x18] sm:$0xff] }
 0x1ac   : > { %1314 = vmatmul.mubr.msk.bf16.gmra.mrb[4].mxu0 %vm927_vm12, %v895_v30 }
 0x242   : > { %v1319_v38 = vpop.f32.mrb[0].mxu1 }
 0x243   : > { %v1031_v46 = vadd.f32 %v1319_v38, %v2386_v31  ;;  %v1022_v56 = vpop.f32.mrb[1].mxu1  ;;  %v1311_v57 = vpop.f32.mrb[0].mxu0 }
 0x244   : > { %v1023_v8 = vadd.f32 %v2386_v31, %v1022_v56  ;;  %v1320_v58 = vpop.f32.mrb[2].mxu1  ;;  %v999_v60 = vadd.f32 %v1311_v57, %v2386_v31  ;;  %v990_v48 = vpop.f32.mrb[1].mxu0 }
 0x245   : > { %v1064_v61 = vmul.f32 %v2389_v16, %v1031_v46  ;;  %v1034_v27 = vadd.f32 %v1320_v58, %v2386_v31  ;;  %v1025_v62 = vpop.f32.mrb[3].mxu1  ;;  %v991_v63 = vadd.f32 %v2386_v31, %v990_v48  ;;  %v1312_v2 = vpop.f32.mrb[2].mxu0 }
 0x246   : > { %v1062_v1 = vmul.f32 %v2389_v16, %v1023_v8  ;;  %v1026_v3 = vadd.f32 %v2386_v31, %v1025_v62  ;;  %v1056_v5 = vmul.f32 %v2389_v16, %v999_v60  ;;  %v1002_v7 = vadd.f32 %v1312_v2, %v2386_v31  ;;  %v993_v4 = vpop.f32.mrb[3].mxu0 }
 0x247   : > { %v1080_v6 = vmax.f32 %v1064_v61, 0.0  ;;  %v1065_v9 = vmul.f32 %v2389_v16, %v1034_v27  ;;  %v1054_v52 = vmul.f32 %v2389_v16, %v991_v63  ;;  %v994_v12 = vadd.f32 %v2386_v31, %v993_v4 }
 0x248   : > { %v1078_v10 = vmax.f32 %v1062_v1, 0.0  ;;  %v1063_v13 = vmul.f32 %v2389_v16, %v1026_v3  ;;  %v1072_v14 = vmax.f32 %v1056_v5, 0.0  ;;  %v1057_v19 = vmul.f32 %v2389_v16, %v1002_v7 }
 0x249   : > { %v1096_v15 = vmin.f32 %v1080_v6, 6.0  ;;  %v1081_v20 = vmax.f32 %v1065_v9, 0.0  ;;  %v1070_v53 = vmax.f32 %v1054_v52, 0.0  ;;  %v1055_v22 = vmul.f32 %v2389_v16, %v994_v12 }
 0x24a   : > { %v1094_v21 = vmin.f32 %v1078_v10, 6.0  ;;  %v1079_v24 = vmax.f32 %v1063_v13, 0.0  ;;  %v1088_v25 = vmin.f32 %v1072_v14, 6.0  ;;  %v1073_v28 = vmax.f32 %v1057_v19, 0.0 }
 0x24b   : > { %1113 = vst.msk [vmem:[%s2409_s15 + $0x50] sm:$0xff] %vm1102_vm13, %v1096_v15  ;;  %v1097_v29 = vmin.f32 %v1081_v20, 6.0  ;;  %v1086_v32 = vmin.f32 %v1070_v53, 6.0  ;;  %v1071_v34 = vmax.f32 %v1055_v22, 0.0 }
 0x24c   : > { %1111 = vst.msk [vmem:[%s2409_s15 + $0x40] sm:$0xff] %vm1102_vm13, %v1094_v21  ;;  %v1095_v35 = vmin.f32 %v1079_v24, 6.0  ;;  %1105 = vst.msk [vmem:[%s2409_s15 + $0x10] sm:$0xff] %vm1102_vm13, %v1088_v25  ;;  %v1089_v36 = vmin.f32 %v1073_v28, 6.0 }
 0x24d   : > { %1114 = vst.msk [vmem:[%s2409_s15 + $0x58] sm:$0xff] %vm1102_vm13, %v1097_v29  ;;  %1103 = vst.msk [vmem:[%s2409_s15] sm:$0xff] %vm1102_vm13, %v1086_v32  ;;  %v1087_v37 = vmin.f32 %v1071_v34, 6.0 }
 0x24e   : > { %1112 = vst.msk [vmem:[%s2409_s15 + $0x48] sm:$0xff] %vm1102_vm13, %v1095_v35  ;;  %1106 = vst.msk [vmem:[%s2409_s15 + $0x18] sm:$0xff] %vm1102_vm13, %v1089_v36 }
 0x24f   : > { %1104 = vst.msk [vmem:[%s2409_s15 + $0x8] sm:$0xff] %vm1102_vm13, %v1087_v37 }
 0x27e   : > { %v1323_v39 = vpop.f32.mrb[4].mxu1 }
 0x27f   : > { %v1047_v40 = vadd.f32 %v1323_v39, %v2386_v31  ;;  %v1038_v41 = vpop.f32.mrb[5].mxu1  ;;  %v1315_v42 = vpop.f32.mrb[4].mxu0 }
 0x280   : > { %v1039_v43 = vadd.f32 %v2386_v31, %v1038_v41  ;;  %v1324_v59 = vpop.f32.mrb[6].mxu1  ;;  %v1015_v44 = vadd.f32 %v1315_v42, %v2386_v31  ;;  %v1006_v49 = vpop.f32.mrb[5].mxu0 }
 0x281   : > { %v1068_v45 = vmul.f32 %v2389_v16, %v1047_v40  ;;  %v1050_v50 = vadd.f32 %v1324_v59, %v2386_v31  ;;  %v1041_v51 = vpop.f32.mrb[7].mxu1  ;;  %v1007_v54 = vadd.f32 %v2386_v31, %v1006_v49  ;;  %v1316_v33 = vpop.f32.mrb[6].mxu0 }
 0x282   : > { %v1066_v55 = vmul.f32 %v2389_v16, %v1039_v43  ;;  %v1042_v0 = vadd.f32 %v2386_v31, %v1041_v51  ;;  %v1060_v11 = vmul.f32 %v2389_v16, %v1015_v44  ;;  %v1018_v23 = vadd.f32 %v1316_v33, %v2386_v31  ;;  %v1009_v18 = vpop.f32.mrb[7].mxu0 }
 0x283   : > { %v1084_v17 = vmax.f32 %v1068_v45, 0.0  ;;  %v1069_v47 = vmul.f32 %v2389_v16, %v1050_v50  ;;  %v1058_v26 = vmul.f32 %v2389_v16, %v1007_v54  ;;  %v1010_v38 = vadd.f32 %v2386_v31, %v1009_v18 }
 0x284   : > { %v1082_v30 = vmax.f32 %v1066_v55, 0.0  ;;  %v1067_v46 = vmul.f32 %v2389_v16, %v1042_v0  ;;  %v1076_v56 = vmax.f32 %v1060_v11, 0.0  ;;  %v1061_v8 = vmul.f32 %v2389_v16, %v1018_v23 }
 0x285   : > { %v1100_v57 = vmin.f32 %v1084_v17, 6.0  ;;  %v1085_v58 = vmax.f32 %v1069_v47, 0.0  ;;  %v1074_v60 = vmax.f32 %v1058_v26, 0.0  ;;  %v1059_v48 = vmul.f32 %v2389_v16, %v1010_v38 }
 0x286   : > { %v1098_v61 = vmin.f32 %v1082_v30, 6.0  ;;  %v1083_v27 = vmax.f32 %v1067_v46, 0.0  ;;  %v1092_v62 = vmin.f32 %v1076_v56, 6.0  ;;  %v1077_v31 = vmax.f32 %v1061_v8, 0.0 }
 0x287   : > { %1117 = vst.msk [vmem:[%s2409_s15 + $0x70] sm:$0xff] %vm1102_vm13, %v1100_v57  ;;  %v1101_v63 = vmin.f32 %v1085_v58, 6.0  ;;  %v1090_v1 = vmin.f32 %v1074_v60, 6.0  ;;  %v1075_v2 = vmax.f32 %v1059_v48, 0.0 }
 0x288   : > { %1115 = vst.msk [vmem:[%s2409_s15 + $0x60] sm:$0xff] %vm1102_vm13, %v1098_v61  ;;  %v1099_v3 = vmin.f32 %v1083_v27, 6.0  ;;  %1109 = vst.msk [vmem:[%s2409_s15 + $0x30] sm:$0xff] %vm1102_vm13, %v1092_v62  ;;  %v1093_v16 = vmin.f32 %v1077_v31, 6.0 }
 0x289   : > { %1118 = vst.msk [vmem:[%s2409_s15 + $0x78] sm:$0xff] %vm1102_vm13, %v1101_v63  ;;  %1107 = vst.msk [vmem:[%s2409_s15 + $0x20] sm:$0xff] %vm1102_vm13, %v1090_v1  ;;  %v1091_v5 = vmin.f32 %v1075_v2, 6.0 }
 0x28a   : > { %1116 = vst.msk [vmem:[%s2409_s15 + $0x68] sm:$0xff] %vm1102_vm13, %v1099_v3  ;;  %1110 = vst.msk [vmem:[%s2409_s15 + $0x38] sm:$0xff] %vm1102_vm13, %v1093_v16 }
 0x28b   : > { %1108 = vst.msk [vmem:[%s2409_s15 + $0x28] sm:$0xff] %vm1102_vm13, %v1091_v5 }
 0x28c   : > { %1627 = shalt.err (!%p1624_p0)
}
 0x28d   : > { %s1628_s2 = scalar_lea.hbm %s2457_s6, 2048  ;;  %s1632_s4 = scalar_lea.hbm %s2572_s10, 8192 }
 0x28e   : > { %p1629_p3 = scmp.ne.s32.totalorder %s2457_s6, %s1628_s2  ;;  %p1633_p1 = scmp.lt.u32.totalorder %s2457_s6, %s2572_s10 }
 0x28f   : > { %p1634_p7 = scmp.lt.u32.totalorder %s1632_s4, %s1628_s2  ;;  %p1636_p12 = scmp.lt.u32.totalorder %s1628_s2, %s2457_s6 }
 0x290   : > { %p1630_p9 = pnand %p1629_p3, %p2573_p4 }
 0x291   : > { %p1635_p11 = por %p1634_p7, %p1633_p1 }
 0x292   : > { %p1631_p2 = pneg %p1630_p9 }
 0x293   : > { %p1637_p5 = por %p1636_p12, %p1635_p11 }
 0x295   : > { %p1638_p6 = pnand %p1637_p5, %p1631_p2 }
 0x297   : > { %1641 = shalt.err (!%p1638_p6)
}
 0x298   : > { %s1763_s22 = smov 128  }
 0x299   : > { %1380 = dma.vmem_to_hbm [thread:$0]  (%p2573_p4), %s2463_s0, 2048, %s2457_s6, %s2471_s18, %s1763_s22, %s1763_s22, %s1755_s30  }
 0x29a PF: > { %s2574_s7 = sld [smem:[#allocation16_spill]]  ;;  %s2575_s28 = sld [smem:[#allocation18_spill]] }
 0x29b   : > { %p1407_p13 = scmp.ge.s32.totalorder %s1744_s25, 2 }
 0x2a0   : > { %s1151_s5 = sand.u32 1, %s2574_s7   ;;  %p2576_p8 = scmp.ne.s32.totalorder %s2575_s28, 0 }
 0x2a1   : > { %s1152_s9 = scalar_lea.sflag [#allocation5], %s1151_s5 }
 0x2a2   : > { %p1397_p10 = pnand %p1407_p13, %p2576_p8 }
 0x2a4   : > { %1699 = dma.done.wait (!%p1397_p10), %s1152_s9, 2048  }
 0x2a5   : > { %1701 = vsyncadd (!%p1397_p10), %s1152_s9, 4294965248  ;;  %s22_s25 = sadd.s32 1, %s1744_s25   ;;  %s2577_s15 = smov %s1708_s16 }
 0x2a6   : > { %p19_p0 = scmp.ge.s32.totalorder %s22_s25, 6   ;;  %s2578_s16 = smov %s1712_s17 }
 0x2a7   : > { %s2579_s17 = smov %s1968_s11  ;;  %s2580_s18 = smov %s1720_s19 }
 0x2a8   : > { %s2581_s19 = smov %s1724_s20  ;;  %s2582_s20 = smov %s1963_s8 }
 0x2a9   : > { %s2583_s21 = smov %s1736_s23  ;;  %s2584_s22 = smov %s1740_s24 }
 0x2aa   : > { %s2585_s23 = smov %s2588_s26  ;;  %s2586_s24 = smov %s2592_s14 }
 0x2ab   :  { %21 = sbr.rel (!%p19_p0) target bundleno = 16 (0x10), region = 95 }
 0x2b2   :  { %1157 = vsyncpa [#allocation4], 1 }
 0x2b3   :  { %1159 = vsyncpa [#allocation4 + $0x1], 1 }
 0x2b4   :  { %1160 = vsyncpa [#allocation9], 1 }
 0x2b5   :  { %1161 = vsyncpa [#allocation5], 1 }
 0x2b6   :  { %1163 = vsyncpa [#allocation5 + $0x1], 1 }
 0x2b7   :  { %1164 = vsyncpa [#allocation6], 1 }
 0x2b8   :  { %1166 = vsyncpa [#allocation6 + $0x1], 1 }

</bundles_post_ra>
